<compile_context>
chip_gen: v7x
topology: tpu7x:2x2x1
jax: 0.10.0
libtpu: 0.0.40
codegen_flags: <defaults>
</compile_context>

<pallas_src>
import numpy as np
import jax
import jax.numpy as jnp
from jax import lax
from jax.experimental import pallas as pl
from jax.experimental.pallas import tpu as pltpu

ALPHA_FIRST = 0.8978238833058
ALPHA_MEAN  = 1.3822406736258
ALPHA_COV   = 0.7414694152899

LANES = 128     # lane width of every buffer
NW = 9          # number of packed (128,128) weight matrices

MEAN_OFF = 0    # mean-branch lanes start
COV_OFF  = 32   # cov-branch lanes start
EPS_OFF  = 17   # epsilon lanes inside the packed input
PROD_OFF = 32   # product lanes used by the assembly matmuls

_FL_DIMS   = [(17, 22), (22, 9)]
_MEAN_DIMS = [(9, 18), (18, 18), (18, 18), (18, 19), (19, 3)]
_COV_DIMS  = [(9, 13), (13, 11), (11, 9)]

# Per-row quadratic terms needed by the tail, expressed as products of
#   operand A = L value (c[u]/10, routed by W[5])          and
#   operand B = eps[j] (routed by W[0]) or L value (c[v]/10, routed by W[6]),
# placed into output lanes by the final placement matrix W[8].
#   entry: (c-index of operand A, 'e'|'c', index of operand B, target out lanes)
_PRODUCTS = [
    # L @ eps  -> z_hat lanes 0..2          (L[i][j] = c[3i+j]/10)
    (0, 'e', 0, (0,)),
    (3, 'e', 0, (1,)), (4, 'e', 1, (1,)),
    (6, 'e', 0, (2,)), (7, 'e', 1, (2,)), (8, 'e', 2, (2,)),
    # L^T L -> cov lanes 6..14 (row major), symmetric entries duplicated
    (0, 'c', 0, (6,)), (3, 'c', 3, (6,)), (6, 'c', 6, (6,)),
    (3, 'c', 4, (7, 9)), (6, 'c', 7, (7, 9)),
    (6, 'c', 8, (8, 12)),
    (4, 'c', 4, (10,)), (7, 'c', 7, (10,)),
    (7, 'c', 8, (11, 13)),
    (8, 'c', 8, (14,)),
]

# Normalization constants from the module (used only by the rearange_RRS glue).
X_MUL = np.array([0.00553, 0.0049, 0.00319, 0.00185, 0.00154, 14.159258,
                  17.414488, 17.922438, 17.255323, 16.621885, 22.62492,
                  28.752264, 31.301714, 31.038338, 30.96801, 45.952972,
                  586.7632], np.float32)
X_ADD = np.array([0.00203, 0.00204, 0.0022, 0.00196, 0.00117, 2.5095496,
                  2.9216232, 2.914767, 2.7880442, 2.4963162, 0.002233,
                  0.0019174, 0.0017812, 0.0018124, 0.0016976, 20.611382,
                  34.561928], np.float32)


def _celu(x, alpha):
  neg = alpha * (jnp.exp(jnp.minimum(x, 0.0) / alpha) - 1.0)
  return jnp.where(x > 0.0, x, neg)


def _celu_lanes(x, alpha_vec, inv_alpha_vec):
  neg = alpha_vec * (jnp.exp(jnp.minimum(x, 0.0) * inv_alpha_vec) - 1.0)
  return jnp.where(x > 0.0, x, neg)


# --------------------------------- kernel -----------------------------------

def _nn_second_layer_kernel(xe_ref, w_ref, b_ref, o_ref):
  xe = xe_ref[...]                                           # (TB, 128)

  # hoisted per-lane constants (single (1,128) vregs)
  lane = lax.broadcasted_iota(jnp.int32, (1, LANES), 1)
  mean_lanes = lane < COV_OFF
  alpha_vec = jnp.where(mean_lanes, ALPHA_MEAN, ALPHA_COV).astype(jnp.float32)
  inv_alpha_vec = jnp.where(mean_lanes, 1.0 / ALPHA_MEAN,
                            1.0 / ALPHA_COV).astype(jnp.float32)

  def dot(a, k):
    return jnp.dot(a, w_ref[k], preferred_element_type=jnp.float32)

  def bias(k):
    return b_ref[k:k + 1, :]                                 # (1, 128)

  # ---- first_layer (scalar alpha); W[0] also routes eps into product lanes ---
  h1_pre = dot(xe, 0) + bias(0)                              # raw: carries eps
  h1 = _celu(h1_pre, ALPHA_FIRST)
  h = _celu(dot(h1, 1) + bias(1), ALPHA_FIRST)               # lanes 0..8; lane0 = chla

  # ---- fused mean/cov stacks: block-diag weights, per-lane CELU alpha --------
  f = h
  for k in (2, 3, 4):
    f = _celu_lanes(dot(f, k) + bias(k), alpha_vec, inv_alpha_vec)
  # f: mean activations in lanes 0..17, final cov-stack output c in lanes 32..40

  # ---- mean layer 4 fused with operand-A routing (raw pre-act doubles as VA) -
  va = dot(f, 5) + bias(5)                    # lanes 0..18: mean4 pre-act
  m4 = _celu(va, ALPHA_MEAN)                  # lanes 32..47: L values (c/10)

  # ---- operand-B routing: L values via W[6], eps values carried in h1_pre ----
  vb = dot(f, 6) + h1_pre
  prods = va * vb                             # lanes 32..47: L*eps and L*L terms

  # ---- mean layer 5: columns duplicated -> mu in lanes 0..2 AND 3..5 ---------
  m_dup = _celu(dot(m4, 7) + bias(7), ALPHA_MEAN)

  # ---- final assembly: chla (lane 0 of h) + quadratic terms, one placement ---
  packed = jnp.where(mean_lanes, h, prods)
  o_ref[...] = m_dup + dot(packed, 8)


# ---------------------- parameter construction / packing ---------------------

def build_raw_params(key):
  """Deterministic PyTorch-style Linear init; returns float32 NumPy params."""
  raw = {}
  for name, layer_dims in (('fl', _FL_DIMS), ('mean', _MEAN_DIMS),
                           ('cov', _COV_DIMS)):
    layers = []
    for fi, fo in layer_dims:
      key, kw, kb = jax.random.split(key, 3)
      bound = 1.0 / np.sqrt(fi)
      w = jax.random.uniform(kw, (fi, fo), jnp.float32, -bound, bound)
      b = jax.random.uniform(kb, (fo,), jnp.float32, -bound, bound)
      layers.append((np.asarray(w), np.asarray(b)))
    raw[name] = layers
  return raw


def pack_params(raw):
  """Pack all layers + routing/placement constants into (9,128,128)/(9,128)."""
  W = np.zeros((NW, LANES, LANES), np.float32)
  B = np.zeros((NW, LANES), np.float32)

  (wa, ba), (wb, bb) = raw['fl']
  W[0, :17, :22] = wa; B[0, :22] = ba           # first_layer[0]
  W[1, :22, :9] = wb;  B[1, :9] = bb            # first_layer[1]

  mean, cov = raw['mean'], raw['cov']
  # fused layer 1: both branches read h (lanes 0..8)
  wm, bm = mean[0]; wc, bc = cov[0]
  W[2, :9, MEAN_OFF:MEAN_OFF + 18] = wm; B[2, MEAN_OFF:MEAN_OFF + 18] = bm
  W[2, :9, COV_OFF:COV_OFF + 13] = wc;   B[2, COV_OFF:COV_OFF + 13] = bc
  # fused layers 2,3: block diagonal
  for k in (1, 2):
    wm, bm = mean[k]; wc, bc = cov[k]
    W[2 + k, MEAN_OFF:MEAN_OFF + wm.shape[0],
             MEAN_OFF:MEAN_OFF + wm.shape[1]] = wm
    B[2 + k, MEAN_OFF:MEAN_OFF + wm.shape[1]] = bm
    W[2 + k, COV_OFF:COV_OFF + wc.shape[0],
             COV_OFF:COV_OFF + wc.shape[1]] = wc
    B[2 + k, COV_OFF:COV_OFF + wc.shape[1]] = bc

  # W[5]: mean layer 4 (18->19) plus operand-A routing (L = c/10)
  wm, bm = mean[3]
  W[5, :18, :19] = wm; B[5, :19] = bm
  # W[7]: mean layer 5 (19->3), columns duplicated into lanes 0..2 and 3..5
  wm, bm = mean[4]
  W[7, :19, 0:3] = wm; W[7, :19, 3:6] = wm
  B[7, 0:3] = bm;      B[7, 3:6] = bm
  # W[8]: placement matrix; chla centering into z_hat and mu lanes
  W[8, 0, 0:6] = 1.0
  # routing/placement for the 16 quadratic products
  for p, (ai, bkind, bi, targets) in enumerate(_PRODUCTS):
    col = PROD_OFF + p
    W[5, COV_OFF + ai, col] = 0.1               # operand A = c/10  (in W[5])
    if bkind == 'e':
      W[0, EPS_OFF + bi, col] = 1.0             # operand B = eps   (in W[0])
    else:
      W[6, COV_OFF + bi, col] = 0.1             # operand B = c/10  (in W[6])
    for t in targets:
      W[8, col, t] = 1.0
  return jnp.asarray(W), jnp.asarray(B)


# --------------------------------- wrapper -----------------------------------

def _round_up(n, m):
  return ((n + m - 1) // m) * m


def nn_second_layer_forward(image, eps, wstack, bstack, *, block_rows=512):
  """image: (B,1,17) f32, eps: (B,1,3) f32 -> (z_hat, cov_z, mu_z)."""
  assert block_rows % 8 == 0
  B = image.shape[0]
  x2d = image.reshape(B, 17).astype(jnp.float32)
  e2d = eps.reshape(B, 3).astype(jnp.float32)

  tb = min(block_rows, _round_up(B, 8))
  bp = _round_up(B, tb)
  xe = jnp.zeros((bp, LANES), jnp.float32)
  xe = xe.at[:B, :17].set(x2d).at[:B, EPS_OFF:EPS_OFF + 3].set(e2d)

  out = pl.pallas_call(
      _nn_second_layer_kernel,
      out_shape=jax.ShapeDtypeStruct((bp, LANES), jnp.float32),
      grid=(bp // tb,),
      in_specs=[
          pl.BlockSpec((tb, LANES), lambda i: (i, 0)),
          pl.BlockSpec((NW, LANES, LANES), lambda i: (0, 0, 0)),  # resident
          pl.BlockSpec((NW, LANES), lambda i: (0, 0)),            # resident
      ],
      out_specs=pl.BlockSpec((tb, LANES), lambda i: (i, 0)),
      compiler_params=pltpu.CompilerParams(
          dimension_semantics=("parallel",)),
  )(xe, wstack, bstack)

  z_hat = out[:B, 0:3]
  mu_z = out[:B, 3:6]
  cov_z = out[:B, 6:15].reshape(B, 3, 3)
  return z_hat, cov_z, mu_z


def _rearange_rrs(x):
  # Plain-JAX port of NN_second_layer.rearange_RRS (pure indexing / affine).
  # TODO(synk): Forward_Model / kd / bbp (the consumers of this tensor) are
  # defined outside the provided source, so rrs_, kd_, bbp_ are not computed.
  lambdas = jnp.array([412.5, 442.5, 490.0, 510.0, 555.0], jnp.float32)
  x_ = x * jnp.asarray(X_MUL) + jnp.asarray(X_ADD)           # (B,1,17)
  B = x.shape[0]
  col0 = x_[:, 0, 5:10]
  col1 = x_[:, 0, 10:15]
  col2 = jnp.broadcast_to(lambdas, (B, 5))
  col3 = jnp.broadcast_to(x_[:, :, 15], (B, 5))
  col4 = jnp.broadcast_to(x_[:, :, 16], (B, 5))
  return jnp.stack([col0, col1, col2, col3, col4], axis=-1)


# --------------------------- NumPy reference ----------------------------------

def _reference(image, eps, raw):
  x = np.asarray(image, np.float32).reshape(-1, 17)
  e = np.asarray(eps, np.float32).reshape(-1, 3)

  def celu(v, a):
    return np.where(v > 0, v, a * (np.exp(np.minimum(v, 0.0) / a) - 1.0))

  (wa, ba), (wb, bb) = raw['fl']
  h = celu(x @ wa + ba, ALPHA_FIRST)
  h = celu(h @ wb + bb, ALPHA_FIRST)
  m = h
  for w, b in raw['mean']:
    m = celu(m @ w + b, ALPHA_MEAN)
  c = h
  for w, b in raw['cov']:
    c = celu(c @ w + b, ALPHA_COV)
  mu = m + h[:, :1]
  Bn = x.shape[0]
  L = np.tril(c.reshape(Bn, 3, 3)) / 10.0
  zhat = mu + np.einsum('bij,bj->bi', L, e)
  cov = np.transpose(L, (0, 2, 1)) @ L
  return zhat.astype(np.float32), cov.astype(np.float32), mu.astype(np.float32)


if __name__ == "__main__":
  key = jax.random.PRNGKey(0)
  k_img, k_eps, k_par = jax.random.split(key, 3)
  B = 90
  image = jax.random.normal(k_img, (B, 1, 17), jnp.float32)
  # TODO(synk): PyTorch draws epsilon via torch.Generator().manual_seed(0); that
  # RNG stream is not reproducible in JAX, so a JAX PRNG draw stands in for it.
  eps = jax.random.normal(k_eps, (B, 1, 3), jnp.float32)

  raw = build_raw_params(k_par)
  wstack, bstack = pack_params(raw)

  # block_rows=32 -> 3-step batch grid at this small size (exercises pipelining);
  # the default (512) is the production tile that fits v5e/v6e/v7x scoped VMEM.
  z_hat, cov_z, mu_z = nn_second_layer_forward(image, eps, wstack, bstack,
                                               block_rows=32)
  rrs_model_input = _rearange_rrs(image)      # translatable glue only
  jax.block_until_ready((z_hat, cov_z, mu_z, rrs_model_input))

  z_ref, cov_ref, mu_ref = _reference(image, eps, raw)
  np.testing.assert_allclose(np.asarray(z_hat), z_ref, rtol=1e-4, atol=1e-5)
  np.testing.assert_allclose(np.asarray(cov_z), cov_ref, rtol=1e-4, atol=1e-5)
  np.testing.assert_allclose(np.asarray(mu_z), mu_ref, rtol=1e-4, atol=1e-5)
  print("KERNEL_OK")
</pallas_src>

<mosaic_0001>
module attributes {stable_mosaic.version = 11 : i64} {
  func.func @_nn_second_layer_kernel(%arg0: i32, %arg1: memref<32x128xf32, #tpu.memory_space<vmem>>, %arg2: memref<9x128x128xf32, #tpu.memory_space<vmem>>, %arg3: memref<9x128xf32, #tpu.memory_space<vmem>>, %arg4: memref<32x128xf32, #tpu.memory_space<vmem>>) attributes {dimension_semantics = [#tpu.dimension_semantics<parallel>], iteration_bounds = array<i64: 3>, scalar_prefetch = 0 : i64, scratch_operands = 0 : i64, tpu.core_type = #tpu.core_type<tc>, window_params = [{transform_indices = @transform_0, window_bounds = array<i64: 32, 128>}, {pipeline_mode = #tpu.pipeline_mode<synchronous>, transform_indices = @transform_1, window_bounds = array<i64: 9, 128, 128>}, {pipeline_mode = #tpu.pipeline_mode<synchronous>, transform_indices = @transform_2, window_bounds = array<i64: 9, 128>}, {transform_indices = @transform_3, window_bounds = array<i64: 32, 128>}]} {
    %c0 = arith.constant 0 : index
    %c0_0 = arith.constant 0 : index
    %0 = vector.load %arg1[%c0, %c0_0] : memref<32x128xf32, #tpu.memory_space<vmem>>, vector<32x128xf32>
    %1 = tpu.iota {dimensions = array<i32: 1>} : vector<1x128xi32>
    %c32_i32 = arith.constant 32 : i32
    %2 = vector.broadcast %c32_i32 : i32 to vector<1x128xi32>
    %3 = arith.cmpi slt, %1, %2 : vector<1x128xi32>
    %cst = arith.constant 1.38224065 : f32
    %cst_1 = arith.constant 0.741469442 : f32
    %4 = vector.broadcast %cst : f32 to vector<1x128xf32>
    %5 = vector.broadcast %cst_1 : f32 to vector<1x128xf32>
    %6 = arith.select %3, %4, %5 : vector<1x128xi1>, vector<1x128xf32>
    %cst_2 = arith.constant 0.723462998 : f32
    %cst_3 = arith.constant 1.34867334 : f32
    %7 = vector.broadcast %cst_2 : f32 to vector<1x128xf32>
    %8 = vector.broadcast %cst_3 : f32 to vector<1x128xf32>
    %9 = arith.select %3, %7, %8 : vector<1x128xi1>, vector<1x128xf32>
    %c0_4 = arith.constant 0 : index
    %c0_5 = arith.constant 0 : index
    %c0_6 = arith.constant 0 : index
    %10 = vector.load %arg2[%c0_4, %c0_5, %c0_6] : memref<9x128x128xf32, #tpu.memory_space<vmem>>, vector<1x128x128xf32>
    %11 = vector.shape_cast %10 : vector<1x128x128xf32> to vector<128x128xf32>
    %cst_7 = arith.constant dense<0.000000e+00> : vector<32x128xf32>
    %12 = tpu.matmul %0, %11, %cst_7 {dimension_numbers = #tpu.dot_dimension_numbers<[1], [0], [0], [1], [0, 0, 1, 1], [], []>} : vector<32x128xf32>, vector<128x128xf32>, vector<32x128xf32> -> vector<32x128xf32>
    %c0_8 = arith.constant 0 : index
    %c0_9 = arith.constant 0 : index
    %13 = vector.load %arg3[%c0_8, %c0_9] : memref<9x128xf32, #tpu.memory_space<vmem>>, vector<1x128xf32>
    %14 = vector.broadcast %13 : vector<1x128xf32> to vector<32x128xf32>
    %15 = arith.addf %12, %14 : vector<32x128xf32>
    %cst_10 = arith.constant 0.000000e+00 : f32
    %16 = vector.broadcast %cst_10 : f32 to vector<32x128xf32>
    %17 = arith.minimumf %15, %16 : vector<32x128xf32>
    %cst_11 = arith.constant 0.89782387 : f32
    %18 = vector.broadcast %cst_11 : f32 to vector<32x128xf32>
    %19 = arith.divf %17, %18 : vector<32x128xf32>
    %20 = math.exp %19 : vector<32x128xf32>
    %cst_12 = arith.constant 1.000000e+00 : f32
    %21 = vector.broadcast %cst_12 : f32 to vector<32x128xf32>
    %22 = arith.subf %20, %21 : vector<32x128xf32>
    %cst_13 = arith.constant 0.89782387 : f32
    %23 = vector.broadcast %cst_13 : f32 to vector<32x128xf32>
    %24 = arith.mulf %23, %22 : vector<32x128xf32>
    %cst_14 = arith.constant 0.000000e+00 : f32
    %25 = vector.broadcast %cst_14 : f32 to vector<32x128xf32>
    %26 = arith.cmpf ogt, %15, %25 : vector<32x128xf32>
    %27 = arith.select %26, %15, %24 : vector<32x128xi1>, vector<32x128xf32>
    %c1 = arith.constant 1 : index
    %c0_15 = arith.constant 0 : index
    %c0_16 = arith.constant 0 : index
    %28 = vector.load %arg2[%c1, %c0_15, %c0_16] : memref<9x128x128xf32, #tpu.memory_space<vmem>>, vector<1x128x128xf32>
    %29 = vector.shape_cast %28 : vector<1x128x128xf32> to vector<128x128xf32>
    %cst_17 = arith.constant dense<0.000000e+00> : vector<32x128xf32>
    %30 = tpu.matmul %27, %29, %cst_17 {dimension_numbers = #tpu.dot_dimension_numbers<[1], [0], [0], [1], [0, 0, 1, 1], [], []>} : vector<32x128xf32>, vector<128x128xf32>, vector<32x128xf32> -> vector<32x128xf32>
    %c1_18 = arith.constant 1 : index
    %c0_19 = arith.constant 0 : index
    %31 = vector.load %arg3[%c1_18, %c0_19] : memref<9x128xf32, #tpu.memory_space<vmem>>, vector<1x128xf32>
    %32 = vector.broadcast %31 : vector<1x128xf32> to vector<32x128xf32>
    %33 = arith.addf %30, %32 : vector<32x128xf32>
    %cst_20 = arith.constant 0.000000e+00 : f32
    %34 = vector.broadcast %cst_20 : f32 to vector<32x128xf32>
    %35 = arith.minimumf %33, %34 : vector<32x128xf32>
    %cst_21 = arith.constant 0.89782387 : f32
    %36 = vector.broadcast %cst_21 : f32 to vector<32x128xf32>
    %37 = arith.divf %35, %36 : vector<32x128xf32>
    %38 = math.exp %37 : vector<32x128xf32>
    %cst_22 = arith.constant 1.000000e+00 : f32
    %39 = vector.broadcast %cst_22 : f32 to vector<32x128xf32>
    %40 = arith.subf %38, %39 : vector<32x128xf32>
    %cst_23 = arith.constant 0.89782387 : f32
    %41 = vector.broadcast %cst_23 : f32 to vector<32x128xf32>
    %42 = arith.mulf %41, %40 : vector<32x128xf32>
    %cst_24 = arith.constant 0.000000e+00 : f32
    %43 = vector.broadcast %cst_24 : f32 to vector<32x128xf32>
    %44 = arith.cmpf ogt, %33, %43 : vector<32x128xf32>
    %45 = arith.select %44, %33, %42 : vector<32x128xi1>, vector<32x128xf32>
    %c2 = arith.constant 2 : index
    %c0_25 = arith.constant 0 : index
    %c0_26 = arith.constant 0 : index
    %46 = vector.load %arg2[%c2, %c0_25, %c0_26] : memref<9x128x128xf32, #tpu.memory_space<vmem>>, vector<1x128x128xf32>
    %47 = vector.shape_cast %46 : vector<1x128x128xf32> to vector<128x128xf32>
    %cst_27 = arith.constant dense<0.000000e+00> : vector<32x128xf32>
    %48 = tpu.matmul %45, %47, %cst_27 {dimension_numbers = #tpu.dot_dimension_numbers<[1], [0], [0], [1], [0, 0, 1, 1], [], []>} : vector<32x128xf32>, vector<128x128xf32>, vector<32x128xf32> -> vector<32x128xf32>
    %c2_28 = arith.constant 2 : index
    %c0_29 = arith.constant 0 : index
    %49 = vector.load %arg3[%c2_28, %c0_29] : memref<9x128xf32, #tpu.memory_space<vmem>>, vector<1x128xf32>
    %50 = vector.broadcast %49 : vector<1x128xf32> to vector<32x128xf32>
    %51 = arith.addf %48, %50 : vector<32x128xf32>
    %cst_30 = arith.constant 0.000000e+00 : f32
    %52 = vector.broadcast %cst_30 : f32 to vector<32x128xf32>
    %53 = arith.minimumf %51, %52 : vector<32x128xf32>
    %54 = vector.broadcast %9 : vector<1x128xf32> to vector<32x128xf32>
    %55 = arith.mulf %53, %54 : vector<32x128xf32>
    %56 = math.exp %55 : vector<32x128xf32>
    %cst_31 = arith.constant 1.000000e+00 : f32
    %57 = vector.broadcast %cst_31 : f32 to vector<32x128xf32>
    %58 = arith.subf %56, %57 : vector<32x128xf32>
    %59 = vector.broadcast %6 : vector<1x128xf32> to vector<32x128xf32>
    %60 = arith.mulf %59, %58 : vector<32x128xf32>
    %cst_32 = arith.constant 0.000000e+00 : f32
    %61 = vector.broadcast %cst_32 : f32 to vector<32x128xf32>
    %62 = arith.cmpf ogt, %51, %61 : vector<32x128xf32>
    %63 = arith.select %62, %51, %60 : vector<32x128xi1>, vector<32x128xf32>
    %c3 = arith.constant 3 : index
    %c0_33 = arith.constant 0 : index
    %c0_34 = arith.constant 0 : index
    %64 = vector.load %arg2[%c3, %c0_33, %c0_34] : memref<9x128x128xf32, #tpu.memory_space<vmem>>, vector<1x128x128xf32>
    %65 = vector.shape_cast %64 : vector<1x128x128xf32> to vector<128x128xf32>
    %cst_35 = arith.constant dense<0.000000e+00> : vector<32x128xf32>
    %66 = tpu.matmul %63, %65, %cst_35 {dimension_numbers = #tpu.dot_dimension_numbers<[1], [0], [0], [1], [0, 0, 1, 1], [], []>} : vector<32x128xf32>, vector<128x128xf32>, vector<32x128xf32> -> vector<32x128xf32>
    %c3_36 = arith.constant 3 : index
    %c0_37 = arith.constant 0 : index
    %67 = vector.load %arg3[%c3_36, %c0_37] : memref<9x128xf32, #tpu.memory_space<vmem>>, vector<1x128xf32>
    %68 = vector.broadcast %67 : vector<1x128xf32> to vector<32x128xf32>
    %69 = arith.addf %66, %68 : vector<32x128xf32>
    %cst_38 = arith.constant 0.000000e+00 : f32
    %70 = vector.broadcast %cst_38 : f32 to vector<32x128xf32>
    %71 = arith.minimumf %69, %70 : vector<32x128xf32>
    %72 = vector.broadcast %9 : vector<1x128xf32> to vector<32x128xf32>
    %73 = arith.mulf %71, %72 : vector<32x128xf32>
    %74 = math.exp %73 : vector<32x128xf32>
    %cst_39 = arith.constant 1.000000e+00 : f32
    %75 = vector.broadcast %cst_39 : f32 to vector<32x128xf32>
    %76 = arith.subf %74, %75 : vector<32x128xf32>
    %77 = vector.broadcast %6 : vector<1x128xf32> to vector<32x128xf32>
    %78 = arith.mulf %77, %76 : vector<32x128xf32>
    %cst_40 = arith.constant 0.000000e+00 : f32
    %79 = vector.broadcast %cst_40 : f32 to vector<32x128xf32>
    %80 = arith.cmpf ogt, %69, %79 : vector<32x128xf32>
    %81 = arith.select %80, %69, %78 : vector<32x128xi1>, vector<32x128xf32>
    %c4 = arith.constant 4 : index
    %c0_41 = arith.constant 0 : index
    %c0_42 = arith.constant 0 : index
    %82 = vector.load %arg2[%c4, %c0_41, %c0_42] : memref<9x128x128xf32, #tpu.memory_space<vmem>>, vector<1x128x128xf32>
    %83 = vector.shape_cast %82 : vector<1x128x128xf32> to vector<128x128xf32>
    %cst_43 = arith.constant dense<0.000000e+00> : vector<32x128xf32>
    %84 = tpu.matmul %81, %83, %cst_43 {dimension_numbers = #tpu.dot_dimension_numbers<[1], [0], [0], [1], [0, 0, 1, 1], [], []>} : vector<32x128xf32>, vector<128x128xf32>, vector<32x128xf32> -> vector<32x128xf32>
    %c4_44 = arith.constant 4 : index
    %c0_45 = arith.constant 0 : index
    %85 = vector.load %arg3[%c4_44, %c0_45] : memref<9x128xf32, #tpu.memory_space<vmem>>, vector<1x128xf32>
    %86 = vector.broadcast %85 : vector<1x128xf32> to vector<32x128xf32>
    %87 = arith.addf %84, %86 : vector<32x128xf32>
    %cst_46 = arith.constant 0.000000e+00 : f32
    %88 = vector.broadcast %cst_46 : f32 to vector<32x128xf32>
    %89 = arith.minimumf %87, %88 : vector<32x128xf32>
    %90 = vector.broadcast %9 : vector<1x128xf32> to vector<32x128xf32>
    %91 = arith.mulf %89, %90 : vector<32x128xf32>
    %92 = math.exp %91 : vector<32x128xf32>
    %cst_47 = arith.constant 1.000000e+00 : f32
    %93 = vector.broadcast %cst_47 : f32 to vector<32x128xf32>
    %94 = arith.subf %92, %93 : vector<32x128xf32>
    %95 = vector.broadcast %6 : vector<1x128xf32> to vector<32x128xf32>
    %96 = arith.mulf %95, %94 : vector<32x128xf32>
    %cst_48 = arith.constant 0.000000e+00 : f32
    %97 = vector.broadcast %cst_48 : f32 to vector<32x128xf32>
    %98 = arith.cmpf ogt, %87, %97 : vector<32x128xf32>
    %99 = arith.select %98, %87, %96 : vector<32x128xi1>, vector<32x128xf32>
    %c5 = arith.constant 5 : index
    %c0_49 = arith.constant 0 : index
    %c0_50 = arith.constant 0 : index
    %100 = vector.load %arg2[%c5, %c0_49, %c0_50] : memref<9x128x128xf32, #tpu.memory_space<vmem>>, vector<1x128x128xf32>
    %101 = vector.shape_cast %100 : vector<1x128x128xf32> to vector<128x128xf32>
    %cst_51 = arith.constant dense<0.000000e+00> : vector<32x128xf32>
    %102 = tpu.matmul %99, %101, %cst_51 {dimension_numbers = #tpu.dot_dimension_numbers<[1], [0], [0], [1], [0, 0, 1, 1], [], []>} : vector<32x128xf32>, vector<128x128xf32>, vector<32x128xf32> -> vector<32x128xf32>
    %c5_52 = arith.constant 5 : index
    %c0_53 = arith.constant 0 : index
    %103 = vector.load %arg3[%c5_52, %c0_53] : memref<9x128xf32, #tpu.memory_space<vmem>>, vector<1x128xf32>
    %104 = vector.broadcast %103 : vector<1x128xf32> to vector<32x128xf32>
    %105 = arith.addf %102, %104 : vector<32x128xf32>
    %cst_54 = arith.constant 0.000000e+00 : f32
    %106 = vector.broadcast %cst_54 : f32 to vector<32x128xf32>
    %107 = arith.minimumf %105, %106 : vector<32x128xf32>
    %cst_55 = arith.constant 1.38224065 : f32
    %108 = vector.broadcast %cst_55 : f32 to vector<32x128xf32>
    %109 = arith.divf %107, %108 : vector<32x128xf32>
    %110 = math.exp %109 : vector<32x128xf32>
    %cst_56 = arith.constant 1.000000e+00 : f32
    %111 = vector.broadcast %cst_56 : f32 to vector<32x128xf32>
    %112 = arith.subf %110, %111 : vector<32x128xf32>
    %cst_57 = arith.constant 1.38224065 : f32
    %113 = vector.broadcast %cst_57 : f32 to vector<32x128xf32>
    %114 = arith.mulf %113, %112 : vector<32x128xf32>
    %cst_58 = arith.constant 0.000000e+00 : f32
    %115 = vector.broadcast %cst_58 : f32 to vector<32x128xf32>
    %116 = arith.cmpf ogt, %105, %115 : vector<32x128xf32>
    %117 = arith.select %116, %105, %114 : vector<32x128xi1>, vector<32x128xf32>
    %c6 = arith.constant 6 : index
    %c0_59 = arith.constant 0 : index
    %c0_60 = arith.constant 0 : index
    %118 = vector.load %arg2[%c6, %c0_59, %c0_60] : memref<9x128x128xf32, #tpu.memory_space<vmem>>, vector<1x128x128xf32>
    %119 = vector.shape_cast %118 : vector<1x128x128xf32> to vector<128x128xf32>
    %cst_61 = arith.constant dense<0.000000e+00> : vector<32x128xf32>
    %120 = tpu.matmul %99, %119, %cst_61 {dimension_numbers = #tpu.dot_dimension_numbers<[1], [0], [0], [1], [0, 0, 1, 1], [], []>} : vector<32x128xf32>, vector<128x128xf32>, vector<32x128xf32> -> vector<32x128xf32>
    %121 = arith.addf %120, %15 : vector<32x128xf32>
    %122 = arith.mulf %105, %121 : vector<32x128xf32>
    %c7 = arith.constant 7 : index
    %c0_62 = arith.constant 0 : index
    %c0_63 = arith.constant 0 : index
    %123 = vector.load %arg2[%c7, %c0_62, %c0_63] : memref<9x128x128xf32, #tpu.memory_space<vmem>>, vector<1x128x128xf32>
    %124 = vector.shape_cast %123 : vector<1x128x128xf32> to vector<128x128xf32>
    %cst_64 = arith.constant dense<0.000000e+00> : vector<32x128xf32>
    %125 = tpu.matmul %117, %124, %cst_64 {dimension_numbers = #tpu.dot_dimension_numbers<[1], [0], [0], [1], [0, 0, 1, 1], [], []>} : vector<32x128xf32>, vector<128x128xf32>, vector<32x128xf32> -> vector<32x128xf32>
    %c7_65 = arith.constant 7 : index
    %c0_66 = arith.constant 0 : index
    %126 = vector.load %arg3[%c7_65, %c0_66] : memref<9x128xf32, #tpu.memory_space<vmem>>, vector<1x128xf32>
    %127 = vector.broadcast %126 : vector<1x128xf32> to vector<32x128xf32>
    %128 = arith.addf %125, %127 : vector<32x128xf32>
    %cst_67 = arith.constant 0.000000e+00 : f32
    %129 = vector.broadcast %cst_67 : f32 to vector<32x128xf32>
    %130 = arith.minimumf %128, %129 : vector<32x128xf32>
    %cst_68 = arith.constant 1.38224065 : f32
    %131 = vector.broadcast %cst_68 : f32 to vector<32x128xf32>
    %132 = arith.divf %130, %131 : vector<32x128xf32>
    %133 = math.exp %132 : vector<32x128xf32>
    %cst_69 = arith.constant 1.000000e+00 : f32
    %134 = vector.broadcast %cst_69 : f32 to vector<32x128xf32>
    %135 = arith.subf %133, %134 : vector<32x128xf32>
    %cst_70 = arith.constant 1.38224065 : f32
    %136 = vector.broadcast %cst_70 : f32 to vector<32x128xf32>
    %137 = arith.mulf %136, %135 : vector<32x128xf32>
    %cst_71 = arith.constant 0.000000e+00 : f32
    %138 = vector.broadcast %cst_71 : f32 to vector<32x128xf32>
    %139 = arith.cmpf ogt, %128, %138 : vector<32x128xf32>
    %140 = arith.select %139, %128, %137 : vector<32x128xi1>, vector<32x128xf32>
    %141 = vector.shape_cast %3 : vector<1x128xi1> to vector<1x128xi1>
    %142 = vector.broadcast %141 : vector<1x128xi1> to vector<32x128xi1>
    %143 = arith.select %142, %45, %122 : vector<32x128xi1>, vector<32x128xf32>
    %c8 = arith.constant 8 : index
    %c0_72 = arith.constant 0 : index
    %c0_73 = arith.constant 0 : index
    %144 = vector.load %arg2[%c8, %c0_72, %c0_73] : memref<9x128x128xf32, #tpu.memory_space<vmem>>, vector<1x128x128xf32>
    %145 = vector.shape_cast %144 : vector<1x128x128xf32> to vector<128x128xf32>
    %cst_74 = arith.constant dense<0.000000e+00> : vector<32x128xf32>
    %146 = tpu.matmul %143, %145, %cst_74 {dimension_numbers = #tpu.dot_dimension_numbers<[1], [0], [0], [1], [0, 0, 1, 1], [], []>} : vector<32x128xf32>, vector<128x128xf32>, vector<32x128xf32> -> vector<32x128xf32>
    %147 = arith.addf %140, %146 : vector<32x128xf32>
    %c0_75 = arith.constant 0 : index
    %c0_76 = arith.constant 0 : index
    %148 = vector.load %arg4[%c0_75, %c0_76] : memref<32x128xf32, #tpu.memory_space<vmem>>, vector<32x128xf32>
    tpu.vector_store %arg4[%c0_75, %c0_76], %147 {strides = array<i32>} : memref<32x128xf32, #tpu.memory_space<vmem>>, vector<32x128xf32>,
    return
  }
  func.func @transform_0(%arg0: i32) -> (i32, i32) {
    %c0_i32 = arith.constant 0 : i32
    %c0_i32_0 = arith.constant 0 : i32
    return %arg0, %c0_i32 : i32, i32
  }
  func.func @transform_1(%arg0: i32) -> (i32, i32, i32) {
    %c0_i32 = arith.constant 0 : i32
    %c0_i32_0 = arith.constant 0 : i32
    %c0_i32_1 = arith.constant 0 : i32
    %c0_i32_2 = arith.constant 0 : i32
    return %c0_i32, %c0_i32_0, %c0_i32_1 : i32, i32, i32
  }
  func.func @transform_2(%arg0: i32) -> (i32, i32) {
    %c0_i32 = arith.constant 0 : i32
    %c0_i32_0 = arith.constant 0 : i32
    %c0_i32_1 = arith.constant 0 : i32
    return %c0_i32, %c0_i32_0 : i32, i32
  }
  func.func @transform_3(%arg0: i32) -> (i32, i32) {
    %c0_i32 = arith.constant 0 : i32
    %c0_i32_0 = arith.constant 0 : i32
    return %arg0, %c0_i32 : i32, i32
  }
}

</mosaic_0001>

<bundles_post_ra>
// kernel: tpu_custom_call.1
= control target key start
LH: loop header
LB: loop body
LE: loop exit
PB: predicated region body
PF: predicated region fallthrough
CT: control target
= control target key end

     0   :  { %8 = vsyncpa [#allocation3], 0  ;;  %s3104_s0 = inlined_call_operand.hbm [shape: f32[96,128], index: 0, kind: input, shape index: {}]   ;;  %s3105_s1 = inlined_call_operand.hbm [shape: f32[9,128,128], index: 1, kind: input, shape index: {}]   ;;  %s3106_s2 = inlined_call_operand.hbm [shape: f32[9,128], index: 2, kind: input, shape index: {}]   ;;  %s3107_s3 = inlined_call_operand.hbm [shape: f32[96,128], index: 3, kind: output, shape index: {}]  }
   0x1   :  { %10 = vsyncpa [#allocation3 + $0x1], 0 }
   0x2   :  { %11 = vsyncpa [#allocation6], 0 }
   0x3   :  { %12 = vsyncpa [#allocation4], 0 }
   0x4   :  { %14 = vsyncpa [#allocation4 + $0x1], 0  ;;  %s2729_s12 = smov 0   ;;  %s2731_s13 = smov 0  }
   0x5   :  { %s2733_s14 = smov 0   ;;  %s2735_s15 = smov 0  }
   0x6 LB: > { %s2750_s16 = sadd.s32 4294967295, %s2697_s15   ;;  %s1531_s17 = sadd.s32 4294967294, %s2697_s15   ;;  %s2697_s15 = sphi %s2735_s15, %s3126_s15   ;;  %s2693_s14 = sphi %s2733_s14, %s3125_s14   ;;  %s2689_s13 = sphi %s2731_s13, %s3124_s13   ;;  %s2685_s12 = sphi %s2729_s12, %s3123_s12  }
   0x7   : > { %p40_p0 = scmp.ne.s32.totalorder %s2689_s13, %s2685_s12  ;;  %p3108_p1 = scmp.eq.s32.totalorder %s2750_s16, 0 }
   0x8   : > { %p112_p3 = scmp.eq.s32.totalorder %s1531_s17, 2  ;;  %p1532_p5 = scmp.ge.s32.totalorder %s2697_s15, 1 }
   0x9   : > { %p2759_p4 = por %p3108_p1, %p40_p0  ;;  %p119_p7 = scmp.lt.s32.totalorder %s2697_s15, 4 }
   0xa   : > { %p2764_p6 = por %p112_p3, %p40_p0  ;;  %s2699_s21 = smov [#allocation5]  }
   0xb   : > { %s3111_s18 = scalar_select %p2759_p4, 1, 0 }
   0xc   : > { %s3112_s19 = scalar_select %p2764_p6, 1, 0 }
   0xd   : > { %p2769_p8 = pnand %p1532_p5, %p119_p7  ;;  %s131_s22 = sshll.u32 %s2699_s21, 4  ;;  %s132_s22 = int_to_ptr.vmem [resolvable:$true] %s131_s22 }
   0xe   : > { %s2700_s24 = smov [#allocation7]   ;;  %s2541_s28 = scalar_lea.hbm %s3105_s1, 18432 }
   0xf   : > { %s3113_s20 = scalar_select %p2769_p8, 1, 0 }
  0x10   : > { %p2424_p9 = pneg %p2769_p8  ;;  %s144_s25 = sshll.u32 %s2700_s24, 4  ;;  %s2781_s25 = int_to_ptr.vmem [resolvable:$true] %s144_s25 }
  0x11   : > { %p2542_p11 = scmp.ne.s32.totalorder %s3105_s1, %s2541_s28  ;;  %p2548_p3 = scmp.lt.u32.totalorder %s2541_s28, %s3105_s1 }
  0x12   : > { %p2777_p10 = pnand %p2424_p9, %p3108_p1 }
  0x14   : > { %p2543_p12 = pneg %p2777_p10 }
  0x16   : > { %p2544_p13 = pnand %p2543_p12, %p2542_p11 }
  0x18   : > { %p2545_p0 = pneg %p2544_p13 }
  0x1a   : > { %p2550_p5 = pnand %p2548_p3, %p2545_p0 }
  0x1c   : > { %2553 = shalt.err (!%p2550_p5)
}
  0x1d   : > { %s2554_s6 = scalar_lea.vmem %s132_s22, 18432  ;;  %p2562_p2 = scmp.lt.s32.totalorder %s132_s22, %s132_s22 }
  0x1e   : > { %p2555_p7 = scmp.ne.s32.totalorder %s132_s22, %s2554_s6  ;;  %p2563_p6 = scmp.lt.s32.totalorder %s2554_s6, %s2554_s6 }
  0x20   : > { %p2557_p9 = pnand %p2555_p7, %p2543_p12  ;;  %p2564_p4 = por %p2563_p6, %p2562_p2 }
  0x22   : > { %p2558_p1 = pneg %p2557_p9 }
  0x24   : > { %p2565_p8 = pnand %p2564_p4, %p2558_p1 }
  0x26   : > { %2568 = shalt.err (!%p2565_p8)
}
  0x27   : > { %s2701_s7 = smov 128   ;;  %s2702_s8 = smov 8  }
  0x28   : > { %2427 = dma.hbm_to_vmem [thread:$0]  (!%p2777_p10), %s3105_s1, 18432, %s132_s22, [#allocation6], %s2701_s7, %s2701_s7, %s2702_s8  }
  0x29   : > { %s2569_s21 = scalar_lea.hbm %s3106_s2, 256 }
  0x2a   : > { %p2570_p1 = scmp.ne.s32.totalorder %s3106_s2, %s2569_s21  ;;  %p2576_p6 = scmp.lt.u32.totalorder %s2569_s21, %s3106_s2 }
  0x2c   : > { %p2572_p2 = pnand %p2570_p1, %p2543_p12 }
  0x2e   : > { %p2573_p4 = pneg %p2572_p2 }
  0x30   : > { %p2578_p8 = pnand %p2576_p6, %p2573_p4 }
  0x32   : > { %2581 = shalt.err (!%p2578_p8)
}
  0x33   : > { %s2582_s22 = scalar_lea.vmem %s2781_s25, 256  ;;  %p2590_p3 = scmp.lt.s32.totalorder %s2781_s25, %s2781_s25 }
  0x34   : > { %p2583_p11 = scmp.ne.s32.totalorder %s2781_s25, %s2582_s22  ;;  %p2591_p5 = scmp.lt.s32.totalorder %s2582_s22, %s2582_s22 }
  0x36   : > { %p2585_p13 = pnand %p2583_p11, %p2543_p12  ;;  %p2592_p7 = por %p2591_p5, %p2590_p3 }
  0x38   : > { %p2586_p0 = pneg %p2585_p13 }
  0x3a   : > { %p2593_p9 = pnand %p2592_p7, %p2586_p0 }
  0x3c   : > { %2596 = shalt.err (!%p2593_p9)
}
  0x3d   : > { %2430 = dma.hbm_to_vmem [thread:$0]  (!%p2777_p10), %s3106_s2, 256, %s2781_s25, [#allocation6], %s2701_s7, %s2701_s7, %s2702_s8  }
  0x3e   : > { %s2837_s23 = sadd.s32 1, %s2697_s15   ;;  %s27_s4 = sadd.s32 1, %s2693_s14 }
  0x3f   : > { %s24_s5 = ssub.s32 %s2697_s15, %s2837_s23  ;;  %p34_p12 = scmp.ne.s32.totalorder %s2693_s14, %s2689_s13 }
  0x40   : > { %p25_p1 = scmp.eq.s32.totalorder %s24_s5, 0  ;;  %p35_p2 = scmp.eq.s32.totalorder %s2697_s15, 0 }
  0x41   : > { %p3115_p4 = scmp.eq.s32.totalorder %s2750_s16, 2  ;;  %p2441_p8 = scmp.lt.s32.totalorder %s2697_s15, 3 }
  0x42   : > { %s2853_s9 = scalar_select %p25_p1, %s2693_s14, %s27_s4  }
  0x43   : > { %p2847_p6 = por %p3115_p4, %p34_p12  ;;  %p36_p11 = por %p35_p2, %p34_p12 }
  0x44   : > { %s158_s10 = sand.u32 1, %s2693_s14   ;;  %s1584_s25 = sshll.u32 %s2697_s15, 9 }
  0x45   : > { %s1536_s11 = sshll.u32 %s158_s10, 5  ;;  %s2860_s24 = scalar_lea.hbm %s3104_s0, %s1584_s25 }
  0x46   : > { %s162_s26 = scalar_lea.vmem [#allocation2], %s1536_s11  ;;  %p2864_p10 = pnand %p2441_p8, %p36_p11 }
  0x47   : > { %s169_s27 = sshll.u32 %s162_s26, 4  ;;  %s2868_s22 = scalar_lea.sflag [#allocation3], %s158_s10  ;;  %s2862_s27 = int_to_ptr.vmem [resolvable:$true] %s169_s27 }
  0x48   : > { %s2597_s29 = scalar_lea.hbm %s2860_s24, 512  ;;  %p2599_p0 = pneg %p2864_p10 }
  0x49   : > { %p2598_p13 = scmp.ne.s32.totalorder %s2860_s24, %s2597_s29  ;;  %s2602_s5 = scalar_lea.hbm %s3104_s0, 1536 }
  0x4a   : > { %p2603_p7 = scmp.lt.u32.totalorder %s2860_s24, %s3104_s0  ;;  %p2604_p9 = scmp.lt.u32.totalorder %s2602_s5, %s2597_s29 }
  0x4b   : > { %p2600_p3 = pnand %p2599_p0, %p2598_p13  ;;  %p2606_p1 = scmp.lt.u32.totalorder %s2597_s29, %s2860_s24 }
  0x4c   : > { %p2605_p12 = por %p2604_p9, %p2603_p7 }
  0x4d   : > { %p2601_p5 = pneg %p2600_p3 }
  0x4e   : > { %p2607_p2 = por %p2606_p1, %p2605_p12 }
  0x50   : > { %p2608_p4 = pnand %p2607_p2, %p2601_p5 }
  0x52   : > { %2611 = shalt.err (!%p2608_p4)
}
  0x53   : > { %s2612_s10 = scalar_lea.vmem %s2862_s27, 512  ;;  %s2703_s17 = smov [#allocation2]  }
  0x54   : > { %p2613_p8 = scmp.ne.s32.totalorder %s2862_s27, %s2612_s10  ;;  %s2617_s21 = sshll.u32 %s2703_s17, 4  ;;  %s2618_s21 = int_to_ptr.vmem [resolvable:$false] %s2617_s21 }
  0x55   : > { %s2619_s26 = scalar_lea.vmem %s2618_s21, 1024  ;;  %p2620_p3 = scmp.lt.s32.totalorder %s2862_s27, %s2618_s21 }
  0x56   : > { %p2615_p11 = pnand %p2613_p8, %p2599_p0  ;;  %p2621_p7 = scmp.lt.s32.totalorder %s2619_s26, %s2612_s10 }
  0x58   : > { %p2616_p13 = pneg %p2615_p11  ;;  %p2622_p9 = por %p2621_p7, %p2620_p3 }
  0x5a   : > { %p2623_p12 = pnand %p2622_p9, %p2616_p13 }
  0x5c   : > { %2626 = shalt.err (!%p2623_p12)
}
  0x5d   : > { %2434 = dma.hbm_to_vmem [thread:$0]  (!%p2864_p10), %s2860_s24, 512, %s2862_s27, %s2868_s22, %s2701_s7, %s2701_s7, %s2702_s8  }
  0x5e   : > { %p3118_p0 = scmp.ne.s32.totalorder %s3113_s20, 0 }
  0x5f   : > { %s2902_s29 = sand.u32 (!%p3118_p0), 1, %s2689_s13   ;;  %p3119_p5 = scmp.ne.s32.totalorder (!%p3118_p0), %s3111_s18, 0 }
  0x60   : > { %181 = sbr.rel (%p3118_p0) target bundleno = 1832 (0x728), region = 32  ;;  %s1540_s30 = sshll.u32 (!%p3118_p0), %s2902_s29, 5 }
  0x61   : > { %s184_s4 = scalar_lea.sflag (!%p3118_p0), [#allocation3], %s2902_s29  ;;  %s2908_s28 = scalar_lea.vmem (!%p3118_p0), [#allocation2], %s1540_s30 }
  0x67   : > { %2672 = dma.done.wait (%p3119_p5), %s184_s4, 512  }
  0x68   : > { %2674 = vsyncadd (%p3119_p5), %s184_s4, 4294966784  ;;  %p3120_p10 = scmp.eq.s32.totalorder %s2750_s16, 0 }
  0x6a   : > { %2676 = dma.done.wait (%p3120_p10), [#allocation6], 18688   ;;  %p3121_p1 = pmov %p3120_p10 }
  0x6b   : > { %v229_v0 = vld [vmem:[#allocation5] sm:$0xff]  ;;  %v230_v1 = vld [vmem:[#allocation5 + $0x8] sm:$0xff]  ;;  %v231_v2 = vld [vmem:[#allocation5 + $0x10] sm:$0xff]  ;;  %s217_s18 = scalar_lea.vmem [#allocation8], %s1540_s30  ;;  %s1585_s7 = sshll.u32 %s2750_s16, 9 }
  0x6c   : > { %2678 = vsyncadd (%p3121_p1), [#allocation6], 4294948608  ;;  %v2108_v3 = vpack.c.bf16 %v230_v1, %v229_v0  ;;  %v232_v4 = vld [vmem:[#allocation5 + $0x18] sm:$0xff]  ;;  %v233_v6 = vld [vmem:[#allocation5 + $0x20] sm:$0xff]  ;;  %s1439_s20 = sshll.u32 %s217_s18, 4  ;;  %s3061_s27 = scalar_lea.hbm %s3107_s3, %s1585_s7  ;;  %s3056_s20 = int_to_ptr.vmem [resolvable:$true] %s1439_s20 }
  0x6d   : > { %v2112_v5 = vpack.c.bf16 %v232_v4, %v231_v2  ;;  %v234_v7 = vld [vmem:[#allocation5 + $0x28] sm:$0xff]  ;;  %v220_v9 = vld [vmem:[%s2908_s28] sm:$0xff]  ;;  %v235_v10 = vld [vmem:[#allocation5 + $0x30] sm:$0xff]  ;;  %s1426_s16 = scalar_lea.sflag [#allocation4], %s2902_s29  ;;  %s2627_s22 = scalar_lea.vmem %s3056_s20, 512 }
  0x6e   : > { %2109 = vmatprep.subr.bf16.mxu0 %v2108_v3  ;;  %v2116_v8 = vpack.c.bf16 %v234_v7, %v233_v6  ;;  %v236_v11 = vld [vmem:[#allocation5 + $0x38] sm:$0xff]  ;;  %1798 = vmatprep.mubr.f32.mxu0 %v220_v9  ;;  %v369_v12 = vld [vmem:[#allocation5 + $0x80] sm:$0xff]  ;;  %v370_v13 = vld [vmem:[#allocation5 + $0x88] sm:$0xff]  ;;  %p2628_p2 = scmp.ne.s32.totalorder %s3056_s20, %s2627_s22  ;;  %s2706_s5 = smov [#allocation8]  }
  0x6f   : > { %2111 = vmatpush3.bf16.msra.mxu0 %v2108_v3  ;;  %v371_v14 = vld [vmem:[#allocation5 + $0x90] sm:$0xff]  ;;  %v372_v15 = vld [vmem:[#allocation5 + $0x98] sm:$0xff]  ;;  %v2140_v16 = vpack.c.bf16 %v370_v13, %v369_v12  ;;  %v2120_v18 = vpack.c.bf16 %v236_v11, %v235_v10  ;;  %v237_v19 = vld [vmem:[#allocation5 + $0x40] sm:$0xff]  ;;  %s2631_s11 = sshll.u32 %s2706_s5, 4  ;;  %s2632_s11 = int_to_ptr.vmem [resolvable:$false] %s2631_s11 }
  0x70   : > { %2113 = vmatprep.subr.bf16.mxu0 %v2112_v5  ;;  %v2144_v17 = vpack.c.bf16 %v372_v15, %v371_v14  ;;  %v238_v20 = vld [vmem:[#allocation5 + $0x48] sm:$0xff]  ;;  %v239_v22 = vld [vmem:[#allocation5 + $0x50] sm:$0xff]  ;;  %v240_v23 = vld [vmem:[#allocation5 + $0x58] sm:$0xff]  ;;  %p2629_p4 = pnand %p2628_p2, %p2847_p6  ;;  %s2633_s25 = scalar_lea.vmem %s2632_s11, 1024 }
  0x71   : > { %2141 = vmatprep.subr.bf16.mxu1 %v2140_v16  ;;  %v2124_v21 = vpack.c.bf16 %v238_v20, %v237_v19  ;;  %v2128_v24 = vpack.c.bf16 %v240_v23, %v239_v22  ;;  %v241_v25 = vld [vmem:[#allocation5 + $0x60] sm:$0xff]  ;;  %v242_v26 = vld [vmem:[#allocation5 + $0x68] sm:$0xff]  ;;  %v243_v28 = vld [vmem:[#allocation5 + $0x70] sm:$0xff]  ;;  %p2634_p11 = scmp.lt.s32.totalorder %s3056_s20, %s2632_s11  ;;  %p2635_p13 = scmp.lt.s32.totalorder %s2633_s25, %s2627_s22 }
  0x72   : > { %2143 = vmatpush3.bf16.msra.mxu1 %v2140_v16  ;;  %v2132_v27 = vpack.c.bf16 %v242_v26, %v241_v25  ;;  %v244_v29 = vld [vmem:[#allocation5 + $0x78] sm:$0xff]  ;;  %v221_v31 = vld [vmem:[%s2908_s28 + $0x8] sm:$0xff]  ;;  %v222_v32 = vld [vmem:[%s2908_s28 + $0x10] sm:$0xff]  ;;  %p2630_p8 = pneg %p2629_p4 }
  0x73   : > { %2115 = vmatpush3.bf16.msra.mxu0 %v2112_v5  ;;  %2145 = vmatprep.subr.bf16.mxu1 %v2144_v17  ;;  %v2136_v30 = vpack.c.bf16 %v244_v29, %v243_v28  ;;  %v223_v33 = vld [vmem:[%s2908_s28 + $0x18] sm:$0xff]  ;;  %v373_v34 = vld [vmem:[#allocation5 + $0xa0] sm:$0xff]  ;;  %v374_v35 = vld [vmem:[#allocation5 + $0xa8] sm:$0xff]  ;;  %p2636_p3 = por %p2635_p13, %p2634_p11 }
  0x74   : > { %2117 = vmatprep.subr.bf16.mxu0 %v2116_v8  ;;  %v2148_v36 = vpack.c.bf16 %v374_v35, %v373_v34  ;;  %v375_v37 = vld [vmem:[#allocation5 + $0xb0] sm:$0xff]  ;;  %v376_v38 = vld [vmem:[#allocation5 + $0xb8] sm:$0xff]  ;;  %v377_v40 = vld [vmem:[#allocation5 + $0xc0] sm:$0xff] }
  0x75   : > { %v2152_v39 = vpack.c.bf16 %v376_v38, %v375_v37  ;;  %v378_v41 = vld [vmem:[#allocation5 + $0xc8] sm:$0xff]  ;;  %v379_v43 = vld [vmem:[#allocation5 + $0xd0] sm:$0xff]  ;;  %v380_v44 = vld [vmem:[#allocation5 + $0xd8] sm:$0xff]  ;;  %p2637_p7 = pnand %p2636_p3, %p2630_p8 }
  0x76   : > { %2147 = vmatpush3.bf16.msra.mxu1 %v2144_v17  ;;  %v2156_v42 = vpack.c.bf16 %v378_v41, %v377_v40  ;;  %v381_v45 = vld [vmem:[#allocation5 + $0xe0] sm:$0xff]  ;;  %v2160_v46 = vpack.c.bf16 %v380_v44, %v379_v43  ;;  %v382_v47 = vld [vmem:[#allocation5 + $0xe8] sm:$0xff]  ;;  %v383_v49 = vld [vmem:[#allocation5 + $0xf0] sm:$0xff] }
  0x77   : > { %2119 = vmatpush3.bf16.msra.mxu0 %v2116_v8  ;;  %2149 = vmatprep.subr.bf16.mxu1 %v2148_v36  ;;  %v2164_v48 = vpack.c.bf16 %v382_v47, %v381_v45  ;;  %v384_v50 = vld [vmem:[#allocation5 + $0xf8] sm:$0xff]  ;;  %v508_v52 = vld [vmem:[#allocation5 + $0x100] sm:$0xff]  ;;  %v509_v53 = vld [vmem:[#allocation5 + $0x108] sm:$0xff] }
  0x78   : > { %2121 = vmatprep.subr.bf16.mxu0 %v2120_v18  ;;  %v2168_v51 = vpack.c.bf16 %v384_v50, %v383_v49  ;;  %v510_v54 = vld [vmem:[#allocation5 + $0x110] sm:$0xff]  ;;  %v2172_v55 = vpack.c.bf16 %v509_v53, %v508_v52  ;;  %v511_v56 = vld [vmem:[#allocation5 + $0x118] sm:$0xff]  ;;  %v1544_v58 = vld [vmem:[#allocation7] ss:$0 sm:$0xff] }
  0x79   : > { %v2176_v57 = vpack.c.bf16 %v511_v56, %v510_v54  ;;  %v514_v34 = vld [vmem:[#allocation5 + $0x130] sm:$0xff]  ;;  %v515_v35 = vld [vmem:[#allocation5 + $0x138] sm:$0xff]  ;;  %v516_v37 = vld [vmem:[#allocation5 + $0x140] sm:$0xff] }
  0x7a   : > { %2151 = vmatpush3.bf16.msra.mxu1 %v2148_v36  ;;  %v2184_v36 = vpack.c.bf16 %v515_v35, %v514_v34  ;;  %v517_v38 = vld [vmem:[#allocation5 + $0x148] sm:$0xff]  ;;  %v518_v40 = vld [vmem:[#allocation5 + $0x150] sm:$0xff]  ;;  %v519_v41 = vld [vmem:[#allocation5 + $0x158] sm:$0xff] }
  0x7b   : > { %2123 = vmatpush3.bf16.msra.mxu0 %v2120_v18  ;;  %2153 = vmatprep.subr.bf16.mxu1 %v2152_v39  ;;  %v520_v43 = vld [vmem:[#allocation5 + $0x160] sm:$0xff]  ;;  %v521_v44 = vld [vmem:[#allocation5 + $0x168] sm:$0xff]  ;;  %v523_v47 = vld [vmem:[#allocation5 + $0x178] sm:$0xff] }
  0x7c   : > { %2125 = vmatprep.subr.bf16.mxu0 %v2124_v21  ;;  %v2196_v45 = vpack.c.bf16 %v521_v44, %v520_v43  ;;  %v647_v49 = vld [vmem:[#allocation5 + $0x180] sm:$0xff]  ;;  %v648_v50 = vld [vmem:[#allocation5 + $0x188] sm:$0xff]  ;;  %v650_v53 = vld [vmem:[#allocation5 + $0x198] sm:$0xff] }
  0x7d   : > { %v2204_v52 = vpack.c.bf16 %v648_v50, %v647_v49  ;;  %v653_v35 = vld [vmem:[#allocation5 + $0x1b0] sm:$0xff]  ;;  %v659_v44 = vld [vmem:[#allocation5 + $0x1e0] sm:$0xff] }
  0x7e   : > { %2155 = vmatpush3.bf16.msra.mxu1 %v2152_v39  ;;  %v2188_v39 = vpack.c.bf16 %v517_v38, %v516_v37  ;;  %v655_v38 = vld [vmem:[#allocation5 + $0x1c0] sm:$0xff] }
  0x7f   : > { %2127 = vmatpush3.bf16.msra.mxu0 %v2124_v21  ;;  %2157 = vmatprep.subr.bf16.mxu1 %v2156_v42  ;;  %v786_v50 = vld [vmem:[#allocation5 + $0x200] sm:$0xff] }
  0x80   : > { %2129 = vmatprep.subr.bf16.mxu0 %v2128_v24 }
  0x82   : > { %2159 = vmatpush3.bf16.msra.mxu1 %v2156_v42  ;;  %v2192_v42 = vpack.c.bf16 %v519_v41, %v518_v40  ;;  %v657_v41 = vld [vmem:[#allocation5 + $0x1d0] sm:$0xff] }
  0x83   : > { %2131 = vmatpush3.bf16.msra.mxu0 %v2128_v24  ;;  %2161 = vmatprep.subr.bf16.mxu1 %v2160_v46 }
  0x84   : > { %2133 = vmatprep.subr.bf16.mxu0 %v2132_v27 }
  0x86   : > { %2163 = vmatpush3.bf16.msra.mxu1 %v2160_v46  ;;  %v522_v46 = vld [vmem:[#allocation5 + $0x170] sm:$0xff] }
  0x87   : > { %2135 = vmatpush3.bf16.msra.mxu0 %v2132_v27  ;;  %2165 = vmatprep.subr.bf16.mxu1 %v2164_v48 }
  0x88   : > { %2137 = vmatprep.subr.bf16.mxu0 %v2136_v30 }
  0x8a   : > { %2167 = vmatpush3.bf16.msra.mxu1 %v2164_v48  ;;  %v2200_v48 = vpack.c.bf16 %v523_v47, %v522_v46  ;;  %v661_v47 = vld [vmem:[#allocation5 + $0x1f0] sm:$0xff] }
  0x8b   : > { %2139 = vmatpush3.bf16.msra.mxu0 %v2136_v30  ;;  %2169 = vmatprep.subr.bf16.mxu1 %v2168_v51 }
  0x8c   : > { %2173 = vmatprep.subr.bf16.mxu0 %v2172_v55 }
  0x8e   : > { %1799 = vmatmul.mubr.f32.vlgmr.msra.gmra.mrb[0].mxu0 %v221_v31  ;;  %2171 = vmatpush3.bf16.msra.mxu1 %v2168_v51  ;;  %v512_v31 = vld [vmem:[#allocation5 + $0x120] sm:$0xff]  ;;  %v649_v51 = vld [vmem:[#allocation5 + $0x190] sm:$0xff] }
  0x8f   : > { %1801 = vmatprep.mubr.f32.mxu0 %v222_v32  ;;  %2175 = vmatpush3.bf16.msra.mxu0 %v2172_v55  ;;  %v513_v32 = vld [vmem:[#allocation5 + $0x128] sm:$0xff]  ;;  %v2208_v54 = vpack.c.bf16 %v650_v53, %v649_v51  ;;  %v1549_v55 = vld [vmem:[#allocation7 + $0x1] ss:$0 sm:$0xff] }
  0x90   : > { %2177 = vmatprep.subr.bf16.mxu0 %v2176_v57  ;;  %2205 = vmatprep.subr.bf16.mxu1 %v2204_v52  ;;  %v787_v51 = vld [vmem:[#allocation5 + $0x208] sm:$0xff] }
  0x91   : > { %v2236_v53 = vpack.c.bf16 %v787_v51, %v786_v50  ;;  %v795_v50 = vld [vmem:[#allocation5 + $0x248] sm:$0xff] }
  0x92   : > { %1802 = vmatmul.mubr.f32.gmra.mrb[2].mxu0 %v223_v33  ;;  %v2180_v33 = vpack.c.bf16 %v513_v32, %v512_v31  ;;  %v651_v32 = vld [vmem:[#allocation5 + $0x1a0] sm:$0xff] }
  0x93   : > { %2179 = vmatpush3.bf16.msra.mxu0 %v2176_v57 }
  0x94   : > { %2181 = vmatprep.subr.bf16.mxu0 %v2180_v33 }
  0x97   : > { %2183 = vmatpush3.bf16.msra.mxu0 %v2180_v33  ;;  %v652_v33 = vld [vmem:[#allocation5 + $0x1a8] sm:$0xff] }
  0x98   : > { %2185 = vmatprep.subr.bf16.mxu0 %v2184_v36  ;;  %v2212_v34 = vpack.c.bf16 %v652_v33, %v651_v32 }
  0x9b   : > { %2187 = vmatpush3.bf16.msra.mxu0 %v2184_v36  ;;  %v654_v36 = vld [vmem:[#allocation5 + $0x1b8] sm:$0xff] }
  0x9c   : > { %2189 = vmatprep.subr.bf16.mxu0 %v2188_v39  ;;  %v2216_v37 = vpack.c.bf16 %v654_v36, %v653_v35 }
  0x9f   : > { %2191 = vmatpush3.bf16.msra.mxu0 %v2188_v39  ;;  %v656_v39 = vld [vmem:[#allocation5 + $0x1c8] sm:$0xff] }
  0xa0   : > { %2193 = vmatprep.subr.bf16.mxu0 %v2192_v42  ;;  %v2220_v40 = vpack.c.bf16 %v656_v39, %v655_v38 }
  0xa3   : > { %2195 = vmatpush3.bf16.msra.mxu0 %v2192_v42  ;;  %v658_v42 = vld [vmem:[#allocation5 + $0x1d8] sm:$0xff] }
  0xa4   : > { %2197 = vmatprep.subr.bf16.mxu0 %v2196_v45  ;;  %v2224_v43 = vpack.c.bf16 %v658_v42, %v657_v41 }
  0xa7   : > { %2199 = vmatpush3.bf16.msra.mxu0 %v2196_v45  ;;  %v660_v45 = vld [vmem:[#allocation5 + $0x1e8] sm:$0xff] }
  0xa8   : > { %2201 = vmatprep.subr.bf16.mxu0 %v2200_v48  ;;  %v2228_v46 = vpack.c.bf16 %v660_v45, %v659_v44  ;;  %v791_v44 = vld [vmem:[#allocation5 + $0x228] sm:$0xff] }
  0xab   : > { %2203 = vmatpush3.bf16.msra.mxu0 %v2200_v48  ;;  %v662_v48 = vld [vmem:[#allocation5 + $0x1f8] sm:$0xff] }
  0xac   : > { %v2232_v49 = vpack.c.bf16 %v662_v48, %v661_v47  ;;  %2237 = vmatprep.subr.bf16.mxu0 %v2236_v53  ;;  %v793_v47 = vld [vmem:[#allocation5 + $0x238] sm:$0xff] }
 0x161   : > { %v1800_v59 = vpop.f32.mrb[0].mxu0 }
 0x162   : > { %v2922_v60 = vadd.f32 %v1800_v59, %v1544_v58  ;;  %v316_v61 = vpop.f32.mrb[1].mxu0 }
 0x163   : > { %v2924_v62 = vadd.f32 %v1544_v58, %v316_v61 }
 0x164   : > { %v336_v63 = vmin.f32 %v2922_v60, 0.0  ;;  %vm361_vm1 = vcmp.gt.f32.partialorder %v2922_v60, 0.0 }
 0x165   : > { %v335_v0 = vmin.f32 %v2924_v62, 0.0  ;;  %v1803_v1 = vpop.f32.mrb[2].mxu0  ;;  %vm360_vm0 = vcmp.gt.f32.partialorder %v2924_v62, 0.0 }
 0x166   : > { %v341_v2 = vmul.f32 1.1138042, %v336_v63  ;;  %v2928_v3 = vadd.f32 %v1803_v1, %v1544_v58  ;;  %v326_v4 = vpop.f32.mrb[3].mxu0 }
 0x167   : > { %v2930_v5 = vadd.f32 %v1544_v58, %v326_v4  ;;  %v340_v6 = vmul.f32 1.1138042, %v335_v0 }
 0x168   : > { %v346_v7 = vmul.f32 1.442695, %v341_v2  ;;  %v338_v8 = vmin.f32 %v2928_v3, 0.0  ;;  %vm363_vm3 = vcmp.gt.f32.partialorder %v2928_v3, 0.0 }
 0x169   : > { %v337_v9 = vmin.f32 %v2930_v5, 0.0  ;;  %v344_v10 = vmul.f32 1.442695, %v340_v6  ;;  %vm362_vm2 = vcmp.gt.f32.partialorder %v2930_v5, 0.0 }
 0x16a   : > { %v343_v11 = vmul.f32 1.1138042, %v338_v8  ;;  %2485 = vpow2.f32 %v346_v7 }
 0x16b   : > { %v342_v12 = vmul.f32 1.1138042, %v337_v9  ;;  %2487 = vpow2.f32 %v344_v10 }
 0x16c   : > { %v350_v13 = vmul.f32 1.442695, %v343_v11 }
 0x16d   : > { %v348_v14 = vmul.f32 1.442695, %v342_v12 }
 0x16e   : > { %2489 = vpow2.f32 %v350_v13 }
 0x16f   : > { %2491 = vpow2.f32 %v348_v14 }
 0x174   : > { %v2486_v15 = vpop.eup %2485 }
 0x175   : > { %v2488_v16 = vpop.eup %2487  ;;  %v1546_v17 = vadd.f32 -1.0, %v2486_v15 }
 0x176   : > { %v1545_v18 = vadd.f32 -1.0, %v2488_v16 }
 0x177   : > { %v357_v19 = vmul.f32 0.89782387, %v1546_v17 }
 0x178   : > { %v2490_v20 = vpop.eup %2489  ;;  %v356_v21 = vmul.f32 0.89782387, %v1545_v18 }
 0x179   : > { %v2492_v22 = vpop.eup %2491  ;;  %v1548_v23 = vadd.f32 -1.0, %v2490_v20  ;;  %v365_v26 = vsel %vm361_vm1, %v2922_v60, %v357_v19 }
 0x17a   : > { %v364_v24 = vsel %vm360_vm0, %v2924_v62, %v356_v21  ;;  %v1547_v25 = vadd.f32 -1.0, %v2492_v22 }
 0x17b   : > { %1836 = vmatprep.mubr.f32.mxu1 %v364_v24  ;;  %v359_v27 = vmul.f32 0.89782387, %v1548_v23 }
 0x17c   : > { %1837 = vmatmul.mubr.f32.vlgmr.msra.gmra.mrb[0].mxu1 %v365_v26  ;;  %v358_v28 = vmul.f32 0.89782387, %v1547_v25 }
 0x17d   : > { %v367_v30 = vsel %vm363_vm3, %v2928_v3, %v359_v27  ;;  %2207 = vmatpush3.bf16.msra.mxu1 %v2204_v52  ;;  %v788_v52 = vld [vmem:[#allocation5 + $0x210] sm:$0xff] }
 0x17e   : > { %v366_v29 = vsel %vm362_vm2, %v2930_v5, %v358_v28  ;;  %2209 = vmatprep.subr.bf16.mxu1 %v2208_v54 }
 0x17f   : > { %1839 = vmatprep.mubr.f32.mxu1 %v366_v29 }
 0x180   : > { %1840 = vmatmul.mubr.f32.gmra.mrb[2].mxu1 %v367_v30 }
 0x181   : > { %2211 = vmatpush3.bf16.msra.mxu1 %v2208_v54  ;;  %v789_v54 = vld [vmem:[#allocation5 + $0x218] sm:$0xff] }
 0x182   : > { %2213 = vmatprep.subr.bf16.mxu1 %v2212_v34 }
 0x185   : > { %2215 = vmatpush3.bf16.msra.mxu1 %v2212_v34 }
 0x186   : > { %2217 = vmatprep.subr.bf16.mxu1 %v2216_v37 }
 0x189   : > { %2219 = vmatpush3.bf16.msra.mxu1 %v2216_v37 }
 0x18a   : > { %2221 = vmatprep.subr.bf16.mxu1 %v2220_v40 }
 0x18d   : > { %2223 = vmatpush3.bf16.msra.mxu1 %v2220_v40 }
 0x18e   : > { %2225 = vmatprep.subr.bf16.mxu1 %v2224_v43 }
 0x191   : > { %2227 = vmatpush3.bf16.msra.mxu1 %v2224_v43  ;;  %v790_v43 = vld [vmem:[#allocation5 + $0x220] sm:$0xff] }
 0x192   : > { %2229 = vmatprep.subr.bf16.mxu1 %v2228_v46  ;;  %v2244_v45 = vpack.c.bf16 %v791_v44, %v790_v43  ;;  %v1067_v43 = vld [vmem:[#allocation5 + $0x310] sm:$0xff]  ;;  %v1068_v44 = vld [vmem:[#allocation5 + $0x318] sm:$0xff] }
 0x195   : > { %2231 = vmatpush3.bf16.msra.mxu1 %v2228_v46  ;;  %v792_v46 = vld [vmem:[#allocation5 + $0x230] sm:$0xff] }
 0x196   : > { %2233 = vmatprep.subr.bf16.mxu1 %v2232_v49  ;;  %v2248_v48 = vpack.c.bf16 %v793_v47, %v792_v46 }
 0x199   : > { %2235 = vmatpush3.bf16.msra.mxu1 %v2232_v49  ;;  %v794_v49 = vld [vmem:[#allocation5 + $0x240] sm:$0xff] }
 0x19a   : > { %v2252_v51 = vpack.c.bf16 %v795_v50, %v794_v49 }
 0x24f   : > { %v1838_v56 = vpop.f32.mrb[0].mxu1 }
 0x250   : > { %v462_v57 = vadd.f32 %v1838_v56, %v1549_v55  ;;  %v456_v58 = vpop.f32.mrb[1].mxu1  ;;  %v224_v56 = vlaneseq }
 0x251   : > { %v457_v59 = vadd.f32 %v1549_v55, %v456_v58  ;;  %v1554_v58 = vld [vmem:[#allocation7 + $0x2] ss:$0 sm:$0xff] }
 0x252   : > { %v476_v61 = vmin.f32 %v462_v57, 0.0  ;;  %vm500_vm5 = vcmp.gt.f32.partialorder %v462_v57, 0.0 }
 0x253   : > { %v475_v63 = vmin.f32 %v457_v59, 0.0  ;;  %v1841_v0 = vpop.f32.mrb[2].mxu1  ;;  %vm499_vm4 = vcmp.gt.f32.partialorder %v457_v59, 0.0 }
 0x254   : > { %v480_v1 = vmul.f32 1.1138042, %v476_v61  ;;  %v472_v2 = vadd.f32 %v1841_v0, %v1549_v55  ;;  %v466_v4 = vpop.f32.mrb[3].mxu1  ;;  %v2704_v0 = vmov 1.3486733  }
 0x255   : > { %v479_v6 = vmul.f32 1.1138042, %v475_v63  ;;  %v467_v7 = vadd.f32 %v1549_v55, %v466_v4  ;;  %v2240_v55 = vpack.c.bf16 %v789_v54, %v788_v52  ;;  %v796_v52 = vld [vmem:[#allocation5 + $0x250] sm:$0xff] }
 0x256   : > { %v485_v8 = vmul.f32 1.442695, %v480_v1  ;;  %v478_v9 = vmin.f32 %v472_v2, 0.0  ;;  %vm502_vm7 = vcmp.gt.f32.partialorder %v472_v2, 0.0 }
 0x257   : > { %v483_v10 = vmul.f32 1.442695, %v479_v6  ;;  %v477_v11 = vmin.f32 %v467_v7, 0.0  ;;  %vm501_vm6 = vcmp.gt.f32.partialorder %v467_v7, 0.0 }
 0x258   : > { %2493 = vpow2.f32 %v485_v8  ;;  %v482_v12 = vmul.f32 1.1138042, %v478_v9 }
 0x259   : > { %2495 = vpow2.f32 %v483_v10  ;;  %v481_v13 = vmul.f32 1.1138042, %v477_v11 }
 0x25a   : > { %v489_v14 = vmul.f32 1.442695, %v482_v12 }
 0x25b   : > { %v487_v15 = vmul.f32 1.442695, %v481_v13 }
 0x25c   : > { %2497 = vpow2.f32 %v489_v14 }
 0x25d   : > { %2499 = vpow2.f32 %v487_v15 }
 0x262   : > { %v2494_v16 = vpop.eup %2493 }
 0x263   : > { %v2496_v17 = vpop.eup %2495  ;;  %v1551_v18 = vadd.f32 -1.0, %v2494_v16 }
 0x264   : > { %v1550_v19 = vadd.f32 -1.0, %v2496_v17 }
 0x265   : > { %v496_v20 = vmul.f32 0.89782387, %v1551_v18 }
 0x266   : > { %v2498_v21 = vpop.eup %2497  ;;  %v495_v22 = vmul.f32 0.89782387, %v1550_v19 }
 0x267   : > { %v2500_v23 = vpop.eup %2499  ;;  %v1553_v24 = vadd.f32 -1.0, %v2498_v21  ;;  %v2944_v27 = vsel %vm500_vm5, %v462_v57, %v496_v20  ;;  %v2954_v57 = vand.u32 127, %v224_v56  ;;  %v799_v56 = vld [vmem:[#allocation5 + $0x268] sm:$0xff] }
 0x268   : > { %v2942_v25 = vsel %vm499_vm4, %v457_v59, %v495_v22  ;;  %v1552_v26 = vadd.f32 -1.0, %v2500_v23  ;;  %v2705_v22 = vmov 0.74146944  }
 0x269   : > { %1874 = vmatprep.mubr.f32.mxu0 %v2942_v25  ;;  %v498_v28 = vmul.f32 0.89782387, %v1553_v24  ;;  %vm226_vm8 = vcmp.lt.s32.totalorder %v2954_v57, 32 }
 0x26a   : > { %1875 = vmatmul.mubr.f32.vlgmr.msra.gmra.mrb[4].mxu0 %v2944_v27  ;;  %v497_v29 = vmul.f32 0.89782387, %v1552_v26  ;;  %v2959_v1 = vsel %vm226_vm8, 0.723463, %v2704_v0  ;;  %v2967_v23 = vsel %vm226_vm8, 1.3822407, %v2705_v22 }
 0x26b   : > { %v2951_v31 = vsel %vm502_vm7, %v472_v2, %v498_v28  ;;  %2239 = vmatpush3.bf16.msra.mxu0 %v2236_v53  ;;  %v797_v53 = vld [vmem:[#allocation5 + $0x258] sm:$0xff]  ;;  %v925_v0 = vld [vmem:[#allocation5 + $0x280] sm:$0xff] }
 0x26c   : > { %v2948_v30 = vsel %vm501_vm6, %v467_v7, %v497_v29  ;;  %2241 = vmatprep.subr.bf16.mxu0 %v2240_v55  ;;  %v2256_v54 = vpack.c.bf16 %v797_v53, %v796_v52 }
 0x26d   : > { %1877 = vmatprep.mubr.f32.mxu0 %v2948_v30 }
 0x26e   : > { %1878 = vmatmul.mubr.f32.gmra.mrb[6].mxu0 %v2951_v31 }
 0x26f   : > { %2243 = vmatpush3.bf16.msra.mxu0 %v2240_v55  ;;  %v798_v55 = vld [vmem:[#allocation5 + $0x260] sm:$0xff] }
 0x270   : > { %2245 = vmatprep.subr.bf16.mxu0 %v2244_v45 }
 0x273   : > { %2247 = vmatpush3.bf16.msra.mxu0 %v2244_v45 }
 0x274   : > { %2249 = vmatprep.subr.bf16.mxu0 %v2248_v48 }
 0x277   : > { %2251 = vmatpush3.bf16.msra.mxu0 %v2248_v48 }
 0x278   : > { %2253 = vmatprep.subr.bf16.mxu0 %v2252_v51 }
 0x27b   : > { %2255 = vmatpush3.bf16.msra.mxu0 %v2252_v51  ;;  %v2304_v51 = vpack.c.bf16 %v1068_v44, %v1067_v43  ;;  %v1171_v43 = vld [vmem:[#allocation5 + $0x380] sm:$0xff]  ;;  %v1172_v44 = vld [vmem:[#allocation5 + $0x388] sm:$0xff] }
 0x27c   : > { %2257 = vmatprep.subr.bf16.mxu0 %v2256_v54 }
 0x27f   : > { %2259 = vmatpush3.bf16.msra.mxu0 %v2256_v54 }
 0x33d   : > { %v1876_v59 = vpop.f32.mrb[4].mxu0 }
 0x33e   : > { %v601_v61 = vadd.f32 %v1876_v59, %v1554_v58  ;;  %v595_v63 = vpop.f32.mrb[5].mxu0  ;;  %v800_v59 = vld [vmem:[#allocation5 + $0x270] sm:$0xff] }
 0x33f   : > { %v596_v2 = vadd.f32 %v1554_v58, %v595_v63 }
 0x340   : > { %v615_v4 = vmin.f32 %v601_v61, 0.0  ;;  %vm639_vm10 = vcmp.gt.f32.partialorder %v601_v61, 0.0 }
 0x341   : > { %v614_v6 = vmin.f32 %v596_v2, 0.0  ;;  %v1879_v7 = vpop.f32.mrb[6].mxu0  ;;  %vm638_vm9 = vcmp.gt.f32.partialorder %v596_v2, 0.0 }
 0x342   : > { %v619_v8 = vmul.f32 %v615_v4, %v2959_v1  ;;  %v611_v9 = vadd.f32 %v1879_v7, %v1554_v58  ;;  %v605_v10 = vpop.f32.mrb[7].mxu0  ;;  %v1065_v4 = vld [vmem:[#allocation5 + $0x300] sm:$0xff]  ;;  %v1066_v7 = vld [vmem:[#allocation5 + $0x308] sm:$0xff] }
 0x343   : > { %v618_v11 = vmul.f32 %v614_v6, %v2959_v1  ;;  %v606_v12 = vadd.f32 %v1554_v58, %v605_v10  ;;  %v2260_v58 = vpack.c.bf16 %v799_v56, %v798_v55  ;;  %v2300_v10 = vpack.c.bf16 %v1066_v7, %v1065_v4  ;;  %v931_v4 = vld [vmem:[#allocation5 + $0x2b0] sm:$0xff] }
 0x344   : > { %v624_v13 = vmul.f32 1.442695, %v619_v8  ;;  %v617_v14 = vmin.f32 %v611_v9, 0.0  ;;  %vm641_vm12 = vcmp.gt.f32.partialorder %v611_v9, 0.0  ;;  %v927_v8 = vld [vmem:[#allocation5 + $0x290] sm:$0xff] }
 0x345   : > { %v622_v15 = vmul.f32 1.442695, %v618_v11  ;;  %v616_v16 = vmin.f32 %v606_v12, 0.0  ;;  %vm640_vm11 = vcmp.gt.f32.partialorder %v606_v12, 0.0  ;;  %2261 = vmatprep.subr.bf16.mxu0 %v2260_v58  ;;  %v1071_v7 = vld [vmem:[#allocation5 + $0x330] sm:$0xff] }
 0x346   : > { %2501 = vpow2.f32 %v624_v13  ;;  %v621_v17 = vmul.f32 %v617_v14, %v2959_v1  ;;  %2263 = vmatpush3.bf16.msra.mxu0 %v2260_v58  ;;  %v929_v58 = vld [vmem:[#allocation5 + $0x2a0] sm:$0xff] }
 0x347   : > { %2503 = vpow2.f32 %v622_v15  ;;  %v620_v18 = vmul.f32 %v616_v16, %v2959_v1 }
 0x348   : > { %v628_v19 = vmul.f32 1.442695, %v621_v17 }
 0x349   : > { %v626_v20 = vmul.f32 1.442695, %v620_v18 }
 0x34a   : > { %2505 = vpow2.f32 %v628_v19 }
 0x34b   : > { %2507 = vpow2.f32 %v626_v20 }
 0x350   : > { %v2502_v21 = vpop.eup %2501 }
 0x351   : > { %v2504_v24 = vpop.eup %2503  ;;  %v1556_v26 = vadd.f32 -1.0, %v2502_v21 }
 0x352   : > { %v1555_v28 = vadd.f32 -1.0, %v2504_v24 }
 0x353   : > { %v635_v29 = vmul.f32 %v1556_v26, %v2967_v23 }
 0x354   : > { %v2506_v32 = vpop.eup %2505  ;;  %v634_v33 = vmul.f32 %v1555_v28, %v2967_v23 }
 0x355   : > { %v2508_v34 = vpop.eup %2507  ;;  %v1558_v35 = vadd.f32 -1.0, %v2506_v32  ;;  %v643_v38 = vsel %vm639_vm10, %v601_v61, %v635_v29  ;;  %v801_v61 = vld [vmem:[#allocation5 + $0x278] sm:$0xff] }
 0x356   : > { %v642_v36 = vsel %vm638_vm9, %v596_v2, %v634_v33  ;;  %v1557_v37 = vadd.f32 -1.0, %v2508_v34  ;;  %v2264_v63 = vpack.c.bf16 %v801_v61, %v800_v59  ;;  %v926_v2 = vld [vmem:[#allocation5 + $0x288] sm:$0xff] }
 0x357   : > { %1912 = vmatprep.mubr.f32.mxu1 %v642_v36  ;;  %v637_v39 = vmul.f32 %v1558_v35, %v2967_v23  ;;  %v2268_v6 = vpack.c.bf16 %v926_v2, %v925_v0  ;;  %v930_v59 = vld [vmem:[#allocation5 + $0x2a8] sm:$0xff] }
 0x358   : > { %1913 = vmatmul.mubr.f32.vlgmr.msra.gmra.mrb[4].mxu1 %v643_v38  ;;  %v636_v40 = vmul.f32 %v1557_v37, %v2967_v23  ;;  %2265 = vmatprep.subr.bf16.mxu0 %v2264_v63  ;;  %v2276_v61 = vpack.c.bf16 %v930_v59, %v929_v58  ;;  %v1070_v0 = vld [vmem:[#allocation5 + $0x328] sm:$0xff] }
 0x359   : > { %v645_v42 = vsel %vm641_vm12, %v611_v9, %v637_v39  ;;  %2267 = vmatpush3.bf16.msra.mxu0 %v2264_v63  ;;  %v928_v9 = vld [vmem:[#allocation5 + $0x298] sm:$0xff]  ;;  %2269 = vmatprep.subr.bf16.mxu1 %v2268_v6  ;;  %v1069_v63 = vld [vmem:[#allocation5 + $0x320] sm:$0xff] }
 0x35a   : > { %v644_v41 = vsel %vm640_vm11, %v606_v12, %v636_v40  ;;  %v2272_v11 = vpack.c.bf16 %v928_v9, %v927_v8  ;;  %2301 = vmatprep.subr.bf16.mxu0 %v2300_v10  ;;  %2271 = vmatpush3.bf16.msra.mxu1 %v2268_v6  ;;  %v1559_v12 = vld [vmem:[#allocation7 + $0x3] ss:$0 sm:$0xff]  ;;  %v2308_v2 = vpack.c.bf16 %v1070_v0, %v1069_v63  ;;  %v932_v6 = vld [vmem:[#allocation5 + $0x2b8] sm:$0xff] }
 0x35b   : > { %1915 = vmatprep.mubr.f32.mxu1 %v644_v41  ;;  %v2280_v8 = vpack.c.bf16 %v932_v6, %v931_v4  ;;  %v1072_v9 = vld [vmem:[#allocation5 + $0x338] sm:$0xff] }
 0x35c   : > { %1916 = vmatmul.mubr.f32.gmra.mrb[6].mxu1 %v645_v42  ;;  %2273 = vmatprep.subr.bf16.mxu1 %v2272_v11 }
 0x35e   : > { %2275 = vmatpush3.bf16.msra.mxu1 %v2272_v11  ;;  %v933_v11 = vld [vmem:[#allocation5 + $0x2c0] sm:$0xff] }
 0x35f   : > { %2277 = vmatprep.subr.bf16.mxu1 %v2276_v61 }
 0x362   : > { %2279 = vmatpush3.bf16.msra.mxu1 %v2276_v61 }
 0x363   : > { %2281 = vmatprep.subr.bf16.mxu1 %v2280_v8 }
 0x366   : > { %2283 = vmatpush3.bf16.msra.mxu1 %v2280_v8 }
 0x42b   : > { %v1914_v13 = vpop.f32.mrb[4].mxu1 }
 0x42c   : > { %v740_v14 = vadd.f32 %v1914_v13, %v1559_v12  ;;  %v734_v15 = vpop.f32.mrb[5].mxu1  ;;  %v1073_v13 = vld [vmem:[#allocation5 + $0x340] sm:$0xff] }
 0x42d   : > { %v735_v16 = vadd.f32 %v1559_v12, %v734_v15  ;;  %v1074_v15 = vld [vmem:[#allocation5 + $0x348] sm:$0xff] }
 0x42e   : > { %v754_v17 = vmin.f32 %v740_v14, 0.0  ;;  %vm778_vm14 = vcmp.gt.f32.partialorder %v740_v14, 0.0 }
 0x42f   : > { %v753_v18 = vmin.f32 %v735_v16, 0.0  ;;  %v1917_v19 = vpop.f32.mrb[6].mxu1  ;;  %vm777_vm13 = vcmp.gt.f32.partialorder %v735_v16, 0.0 }
 0x430   : > { %v758_v20 = vmul.f32 %v754_v17, %v2959_v1  ;;  %v750_v21 = vadd.f32 %v1917_v19, %v1559_v12  ;;  %v744_v22 = vpop.f32.mrb[7].mxu1  ;;  %v935_v17 = vld [vmem:[#allocation5 + $0x2d0] sm:$0xff] }
 0x431   : > { %v757_v24 = vmul.f32 %v753_v18, %v2959_v1  ;;  %v745_v26 = vadd.f32 %v1559_v12, %v744_v22  ;;  %v934_v12 = vld [vmem:[#allocation5 + $0x2c8] sm:$0xff]  ;;  %v936_v18 = vld [vmem:[#allocation5 + $0x2d8] sm:$0xff]  ;;  %v1075_v19 = vld [vmem:[#allocation5 + $0x350] sm:$0xff] }
 0x432   : > { %v763_v28 = vmul.f32 1.442695, %v758_v20  ;;  %v756_v29 = vmin.f32 %v750_v21, 0.0  ;;  %vm780_vm0 = vcmp.gt.f32.partialorder %v750_v21, 0.0  ;;  %v2288_v20 = vpack.c.bf16 %v936_v18, %v935_v17  ;;  %v1174_v17 = vld [vmem:[#allocation5 + $0x398] sm:$0xff] }
 0x433   : > { %v761_v32 = vmul.f32 1.442695, %v757_v24  ;;  %v755_v33 = vmin.f32 %v745_v26, 0.0  ;;  %vm779_vm15 = vcmp.gt.f32.partialorder %v745_v26, 0.0  ;;  %v937_v24 = vld [vmem:[#allocation5 + $0x2e0] sm:$0xff] }
 0x434   : > { %2509 = vpow2.f32 %v763_v28  ;;  %v760_v34 = vmul.f32 %v756_v29, %v2959_v1  ;;  %v1077_v28 = vld [vmem:[#allocation5 + $0x360] sm:$0xff] }
 0x435   : > { %2511 = vpow2.f32 %v761_v32  ;;  %v759_v35 = vmul.f32 %v755_v33, %v2959_v1  ;;  %v1078_v32 = vld [vmem:[#allocation5 + $0x368] sm:$0xff] }
 0x436   : > { %v767_v36 = vmul.f32 1.442695, %v760_v34  ;;  %v2324_v33 = vpack.c.bf16 %v1078_v32, %v1077_v28  ;;  %v939_v34 = vld [vmem:[#allocation5 + $0x2f0] sm:$0xff]  ;;  %v1320_v32 = vld [vmem:[#allocation5 + $0x420] sm:$0xff] }
 0x437   : > { %v765_v37 = vmul.f32 1.442695, %v759_v35  ;;  %v940_v35 = vld [vmem:[#allocation5 + $0x2f8] sm:$0xff] }
 0x438   : > { %2513 = vpow2.f32 %v767_v36  ;;  %v1079_v36 = vld [vmem:[#allocation5 + $0x370] sm:$0xff] }
 0x439   : > { %2515 = vpow2.f32 %v765_v37  ;;  %v2296_v37 = vpack.c.bf16 %v940_v35, %v939_v34 }
 0x43e   : > { %v2510_v38 = vpop.eup %2509 }
 0x43f   : > { %v2512_v39 = vpop.eup %2511  ;;  %v1561_v40 = vadd.f32 -1.0, %v2510_v38  ;;  %v1080_v38 = vld [vmem:[#allocation5 + $0x378] sm:$0xff] }
 0x440   : > { %v1560_v41 = vadd.f32 -1.0, %v2512_v39  ;;  %v2328_v39 = vpack.c.bf16 %v1080_v38, %v1079_v36  ;;  %v1322_v38 = vld [vmem:[#allocation5 + $0x430] sm:$0xff] }
 0x441   : > { %v774_v42 = vmul.f32 %v1561_v40, %v2967_v23  ;;  %v1316_v40 = vld [vmem:[#allocation5 + $0x400] sm:$0xff] }
 0x442   : > { %v2514_v45 = vpop.eup %2513  ;;  %v773_v46 = vmul.f32 %v1560_v41, %v2967_v23  ;;  %v1317_v41 = vld [vmem:[#allocation5 + $0x408] sm:$0xff] }
 0x443   : > { %v2516_v47 = vpop.eup %2515  ;;  %v1563_v48 = vadd.f32 -1.0, %v2514_v45  ;;  %v782_v52 = vsel %vm778_vm14, %v740_v14, %v774_v42  ;;  %v2284_v14 = vpack.c.bf16 %v934_v12, %v933_v11  ;;  %v2981_v42 = vpack.c.bf16 %v1317_v41, %v1316_v40  ;;  %v1324_v40 = vld [vmem:[#allocation5 + $0x440] sm:$0xff]  ;;  %v1325_v41 = vld [vmem:[#allocation5 + $0x448] sm:$0xff] }
 0x444   : > { %v781_v49 = vsel %vm777_vm13, %v735_v16, %v773_v46  ;;  %v1562_v50 = vadd.f32 -1.0, %v2516_v47  ;;  %v2316_v16 = vpack.c.bf16 %v1074_v15, %v1073_v13  ;;  %v2332_v45 = vpack.c.bf16 %v1172_v44, %v1171_v43  ;;  %v1564_v46 = vld [vmem:[#allocation7 + $0x4] ss:$0 sm:$0xff]  ;;  %v1318_v13 = vld [vmem:[#allocation5 + $0x410] sm:$0xff] }
 0x445   : > { %1950 = vmatprep.mubr.f32.mxu0 %v781_v49  ;;  %v776_v53 = vmul.f32 %v1563_v48, %v2967_v23  ;;  %2285 = vmatprep.subr.bf16.mxu1 %v2284_v14  ;;  %v3004_v43 = vpack.c.bf16 %v1325_v41, %v1324_v40  ;;  %v1326_v44 = vld [vmem:[#allocation5 + $0x450] sm:$0xff] }
 0x446   : > { %1951 = vmatmul.mubr.f32.vlgmr.msra.gmra.mrb[8].mxu0 %v782_v52  ;;  %v775_v54 = vmul.f32 %v1562_v50, %v2967_v23  ;;  %2287 = vmatpush3.bf16.msra.mxu1 %v2284_v14  ;;  %v1319_v14 = vld [vmem:[#allocation5 + $0x418] sm:$0xff] }
 0x447   : > { %2303 = vmatpush3.bf16.msra.mxu0 %v2300_v10  ;;  %v784_v56 = vsel %vm780_vm0, %v750_v21, %v776_v53  ;;  %v2312_v10 = vpack.c.bf16 %v1072_v9, %v1071_v7  ;;  %v1076_v21 = vld [vmem:[#allocation5 + $0x358] sm:$0xff]  ;;  %2289 = vmatprep.subr.bf16.mxu1 %v2288_v20 }
 0x448   : > { %v783_v55 = vsel %vm779_vm15, %v745_v26, %v775_v54  ;;  %2305 = vmatprep.subr.bf16.mxu0 %v2304_v51  ;;  %v2320_v22 = vpack.c.bf16 %v1076_v21, %v1075_v19  ;;  %v938_v26 = vld [vmem:[#allocation5 + $0x2e8] sm:$0xff]  ;;  %v2990_v21 = vpack.c.bf16 %v1319_v14, %v1318_v13  ;;  %v1569_v13 = vld [vmem:[#allocation7 + $0x5] ss:$0 sm:$0xff] }
 0x449   : > { %1953 = vmatprep.mubr.f32.mxu0 %v783_v55  ;;  %v2292_v29 = vpack.c.bf16 %v938_v26, %v937_v24 }
 0x44a   : > { %1954 = vmatmul.mubr.f32.gmra.mrb[10].mxu0 %v784_v56  ;;  %2291 = vmatpush3.bf16.msra.mxu1 %v2288_v20 }
 0x44b   : > { %2307 = vmatpush3.bf16.msra.mxu0 %v2304_v51  ;;  %2293 = vmatprep.subr.bf16.mxu1 %v2292_v29 }
 0x44c   : > { %2309 = vmatprep.subr.bf16.mxu0 %v2308_v2 }
 0x44e   : > { %2295 = vmatpush3.bf16.msra.mxu1 %v2292_v29 }
 0x44f   : > { %2311 = vmatpush3.bf16.msra.mxu0 %v2308_v2  ;;  %2297 = vmatprep.subr.bf16.mxu1 %v2296_v37 }
 0x450   : > { %2313 = vmatprep.subr.bf16.mxu0 %v2312_v10 }
 0x452   : > { %2299 = vmatpush3.bf16.msra.mxu1 %v2296_v37 }
 0x453   : > { %2315 = vmatpush3.bf16.msra.mxu0 %v2312_v10  ;;  %2333 = vmatprep.subr.bf16.mxu1 %v2332_v45 }
 0x454   : > { %2317 = vmatprep.subr.bf16.mxu0 %v2316_v16 }
 0x457   : > { %2319 = vmatpush3.bf16.msra.mxu0 %v2316_v16  ;;  %v1173_v16 = vld [vmem:[#allocation5 + $0x390] sm:$0xff] }
 0x458   : > { %2321 = vmatprep.subr.bf16.mxu0 %v2320_v22  ;;  %v2336_v26 = vpack.c.bf16 %v1174_v17, %v1173_v16 }
 0x45b   : > { %2323 = vmatpush3.bf16.msra.mxu0 %v2320_v22 }
 0x45c   : > { %2325 = vmatprep.subr.bf16.mxu0 %v2324_v33 }
 0x45f   : > { %2327 = vmatpush3.bf16.msra.mxu0 %v2324_v33  ;;  %v1321_v33 = vld [vmem:[#allocation5 + $0x428] sm:$0xff] }
 0x460   : > { %2329 = vmatprep.subr.bf16.mxu0 %v2328_v39  ;;  %v2996_v36 = vpack.c.bf16 %v1321_v33, %v1320_v32 }
 0x463   : > { %2331 = vmatpush3.bf16.msra.mxu0 %v2328_v39  ;;  %v1323_v39 = vld [vmem:[#allocation5 + $0x438] sm:$0xff] }
 0x464   : > { %2365 = vmatprep.subr.bf16.mxu0 %v2981_v42 }
 0x519   : > { %v1952_v47 = vpop.f32.mrb[8].mxu0 }
 0x51a   : > { %v879_v48 = vadd.f32 %v1952_v47, %v1564_v46  ;;  %v873_v49 = vpop.f32.mrb[9].mxu0  ;;  %v1328_v47 = vld [vmem:[#allocation5 + $0x460] sm:$0xff] }
 0x51b   : > { %v874_v50 = vadd.f32 %v1564_v46, %v873_v49 }
 0x51c   : > { %v893_v51 = vmin.f32 %v879_v48, 0.0  ;;  %vm917_vm2 = vcmp.gt.f32.partialorder %v879_v48, 0.0 }
 0x51d   : > { %v892_v52 = vmin.f32 %v874_v50, 0.0  ;;  %v1955_v53 = vpop.f32.mrb[10].mxu0  ;;  %vm916_vm1 = vcmp.gt.f32.partialorder %v874_v50, 0.0 }
 0x51e   : > { %v897_v54 = vmul.f32 %v893_v51, %v2959_v1  ;;  %v889_v55 = vadd.f32 %v1955_v53, %v1564_v46  ;;  %v883_v56 = vpop.f32.mrb[11].mxu0  ;;  %v1176_v51 = vld [vmem:[#allocation5 + $0x3a8] sm:$0xff]  ;;  %v1330_v53 = vld [vmem:[#allocation5 + $0x470] sm:$0xff] }
 0x51f   : > { %v896_v58 = vmul.f32 %v892_v52, %v2959_v1  ;;  %v884_v59 = vadd.f32 %v1564_v46, %v883_v56  ;;  %v1177_v56 = vld [vmem:[#allocation5 + $0x3b0] sm:$0xff] }
 0x520   : > { %v902_v61 = vmul.f32 1.442695, %v897_v54  ;;  %v895_v63 = vmin.f32 %v889_v55, 0.0  ;;  %vm919_vm4 = vcmp.gt.f32.partialorder %v889_v55, 0.0  ;;  %v1331_v54 = vld [vmem:[#allocation5 + $0x478] sm:$0xff] }
 0x521   : > { %v900_v0 = vmul.f32 1.442695, %v896_v58  ;;  %v894_v2 = vmin.f32 %v884_v59, 0.0  ;;  %vm918_vm3 = vcmp.gt.f32.partialorder %v884_v59, 0.0  ;;  %v1178_v58 = vld [vmem:[#allocation5 + $0x3b8] sm:$0xff] }
 0x522   : > { %2517 = vpow2.f32 %v902_v61  ;;  %v899_v4 = vmul.f32 %v895_v63, %v2959_v1  ;;  %v1179_v61 = vld [vmem:[#allocation5 + $0x3c0] sm:$0xff]  ;;  %v1180_v63 = vld [vmem:[#allocation5 + $0x3c8] sm:$0xff] }
 0x523   : > { %2519 = vpow2.f32 %v900_v0  ;;  %v898_v6 = vmul.f32 %v894_v2, %v2959_v1  ;;  %v2348_v0 = vpack.c.bf16 %v1180_v63, %v1179_v61  ;;  %v1181_v2 = vld [vmem:[#allocation5 + $0x3d0] sm:$0xff] }
 0x524   : > { %v906_v7 = vmul.f32 1.442695, %v899_v4  ;;  %v1182_v4 = vld [vmem:[#allocation5 + $0x3d8] sm:$0xff] }
 0x525   : > { %v904_v8 = vmul.f32 1.442695, %v898_v6  ;;  %v2352_v6 = vpack.c.bf16 %v1182_v4, %v1181_v2 }
 0x526   : > { %2521 = vpow2.f32 %v906_v7  ;;  %v1183_v7 = vld [vmem:[#allocation5 + $0x3e0] sm:$0xff] }
 0x527   : > { %2523 = vpow2.f32 %v904_v8  ;;  %v1184_v8 = vld [vmem:[#allocation5 + $0x3e8] sm:$0xff] }
 0x52c   : > { %v2518_v9 = vpop.eup %2517 }
 0x52d   : > { %v2520_v10 = vpop.eup %2519  ;;  %v1566_v11 = vadd.f32 -1.0, %v2518_v9  ;;  %v2356_v9 = vpack.c.bf16 %v1184_v8, %v1183_v7 }
 0x52e   : > { %v1565_v12 = vadd.f32 -1.0, %v2520_v10  ;;  %v1185_v10 = vld [vmem:[#allocation5 + $0x3f0] sm:$0xff] }
 0x52f   : > { %v913_v15 = vmul.f32 %v1566_v11, %v2967_v23  ;;  %v1186_v11 = vld [vmem:[#allocation5 + $0x3f8] sm:$0xff] }
 0x530   : > { %v2522_v18 = vpop.eup %2521  ;;  %v912_v19 = vmul.f32 %v1565_v12, %v2967_v23  ;;  %v2360_v12 = vpack.c.bf16 %v1186_v11, %v1185_v10 }
 0x531   : > { %v2524_v20 = vpop.eup %2523  ;;  %v1568_v1 = vadd.f32 -1.0, %v2522_v18  ;;  %v921_v28 = vsel %vm917_vm2, %v879_v48, %v913_v15  ;;  %v1329_v48 = vld [vmem:[#allocation5 + $0x468] sm:$0xff] }
 0x532   : > { %v920_v22 = vsel %vm916_vm1, %v874_v50, %v912_v19  ;;  %v1567_v24 = vadd.f32 -1.0, %v2524_v20  ;;  %v3013_v49 = vpack.c.bf16 %v1329_v48, %v1328_v47  ;;  %v1175_v50 = vld [vmem:[#allocation5 + $0x3a0] sm:$0xff] }
 0x533   : > { %1988 = vmatprep.mubr.f32.mxu1 %v920_v22  ;;  %2026 = vmatprep.mubr.f32.mxu0 %v920_v22  ;;  %v915_v29 = vmul.f32 %v1568_v1, %v2967_v23  ;;  %v2340_v52 = vpack.c.bf16 %v1176_v51, %v1175_v50 }
 0x534   : > { %1989 = vmatmul.mubr.f32.vlgmr.msra.gmra.mrb[8].mxu1 %v921_v28  ;;  %2027 = vmatmul.mubr.f32.vlgmr.msra.gmra.mrb[12].mxu0 %v921_v28  ;;  %v914_v34 = vmul.f32 %v1567_v24, %v2967_v23  ;;  %v3000_v23 = vpack.c.bf16 %v1323_v39, %v1322_v38 }
 0x535   : > { %2367 = vmatpush3.bf16.msra.mxu0 %v2981_v42  ;;  %2335 = vmatpush3.bf16.msra.mxu1 %v2332_v45  ;;  %v923_v37 = vsel %vm919_vm4, %v889_v55, %v915_v29  ;;  %v1327_v45 = vld [vmem:[#allocation5 + $0x458] sm:$0xff]  ;;  %v3017_v55 = vpack.c.bf16 %v1331_v54, %v1330_v53 }
 0x536   : > { %v922_v35 = vsel %vm918_vm3, %v884_v59, %v914_v34  ;;  %2369 = vmatprep.subr.bf16.mxu0 %v2990_v21  ;;  %2337 = vmatprep.subr.bf16.mxu1 %v2336_v26  ;;  %v3008_v46 = vpack.c.bf16 %v1327_v45, %v1326_v44  ;;  %v2344_v59 = vpack.c.bf16 %v1178_v58, %v1177_v56 }
 0x537   : > { %1991 = vmatprep.mubr.f32.mxu1 %v922_v35  ;;  %2029 = vmatprep.mubr.f32.mxu0 %v922_v35 }
 0x538   : > { %1992 = vmatmul.mubr.f32.gmra.mrb[10].mxu1 %v923_v37  ;;  %2030 = vmatmul.mubr.f32.gmra.mrb[14].mxu0 %v923_v37 }
 0x539   : > { %2371 = vmatpush3.bf16.msra.mxu0 %v2990_v21  ;;  %2339 = vmatpush3.bf16.msra.mxu1 %v2336_v26 }
 0x53a   : > { %2373 = vmatprep.subr.bf16.mxu0 %v2996_v36  ;;  %2341 = vmatprep.subr.bf16.mxu1 %v2340_v52 }
 0x53d   : > { %2375 = vmatpush3.bf16.msra.mxu0 %v2996_v36  ;;  %2343 = vmatpush3.bf16.msra.mxu1 %v2340_v52 }
 0x53e   : > { %2377 = vmatprep.subr.bf16.mxu0 %v3000_v23  ;;  %2345 = vmatprep.subr.bf16.mxu1 %v2344_v59 }
 0x541   : > { %2379 = vmatpush3.bf16.msra.mxu0 %v3000_v23  ;;  %2347 = vmatpush3.bf16.msra.mxu1 %v2344_v59 }
 0x542   : > { %2381 = vmatprep.subr.bf16.mxu0 %v3004_v43  ;;  %2349 = vmatprep.subr.bf16.mxu1 %v2348_v0 }
 0x545   : > { %2383 = vmatpush3.bf16.msra.mxu0 %v3004_v43  ;;  %2351 = vmatpush3.bf16.msra.mxu1 %v2348_v0 }
 0x546   : > { %2385 = vmatprep.subr.bf16.mxu0 %v3008_v46  ;;  %2353 = vmatprep.subr.bf16.mxu1 %v2352_v6 }
 0x549   : > { %2387 = vmatpush3.bf16.msra.mxu0 %v3008_v46  ;;  %2355 = vmatpush3.bf16.msra.mxu1 %v2352_v6 }
 0x54a   : > { %2389 = vmatprep.subr.bf16.mxu0 %v3013_v49  ;;  %2357 = vmatprep.subr.bf16.mxu1 %v2356_v9 }
 0x54d   : > { %2391 = vmatpush3.bf16.msra.mxu0 %v3013_v49  ;;  %2359 = vmatpush3.bf16.msra.mxu1 %v2356_v9 }
 0x54e   : > { %2393 = vmatprep.subr.bf16.mxu0 %v3017_v55  ;;  %2361 = vmatprep.subr.bf16.mxu1 %v2360_v12 }
 0x551   : > { %2395 = vmatpush3.bf16.msra.mxu0 %v3017_v55  ;;  %2363 = vmatpush3.bf16.msra.mxu1 %v2360_v12 }
 0x552   : > { %2396 = vmatprep.subr.bf16.mxu1 %v2981_v42 }
 0x607   : > { %v1990_v14 = vpop.f32.mrb[8].mxu1  ;;  %v2028_v15 = vpop.f32.mrb[12].mxu0 }
 0x608   : > { %v1018_v16 = vadd.f32 %v1990_v14, %v1569_v13  ;;  %v1153_v17 = vadd.f32 %v2028_v15, %v2922_v60  ;;  %v1012_v18 = vpop.f32.mrb[9].mxu1  ;;  %v1147_v19 = vpop.f32.mrb[13].mxu0 }
 0x609   : > { %v1013_v20 = vadd.f32 %v1569_v13, %v1012_v18  ;;  %v1148_v1 = vadd.f32 %v1147_v19, %v2924_v62 }
 0x60a   : > { %v1032_v22 = vmin.f32 %v1018_v16, 0.0  ;;  %v1167_v24 = vmul.f32 %v1153_v17, %v1018_v16  ;;  %vm1057_vm6 = vcmp.gt.f32.partialorder %v1018_v16, 0.0 }
 0x60b   : > { %v1031_v26 = vmin.f32 %v1013_v20, 0.0  ;;  %v1166_v28 = vmul.f32 %v1148_v1, %v1013_v20  ;;  %v1993_v29 = vpop.f32.mrb[10].mxu1  ;;  %v2031_v32 = vpop.f32.mrb[14].mxu0  ;;  %vm1056_vm5 = vcmp.gt.f32.partialorder %v1013_v20, 0.0 }
 0x60c   : > { %v1037_v33 = vmul.f32 0.723463, %v1032_v22  ;;  %v1028_v34 = vadd.f32 %v1993_v29, %v1569_v13  ;;  %v1163_v35 = vadd.f32 %v2031_v32, %v2928_v3  ;;  %v1022_v37 = vpop.f32.mrb[11].mxu1  ;;  %v1157_v38 = vpop.f32.mrb[15].mxu0  ;;  %v1312_v47 = vsel %vm226_vm8, %v2944_v27, %v1167_v24 }
 0x60d   : > { %v1036_v39 = vmul.f32 0.723463, %v1031_v26  ;;  %v1023_v40 = vadd.f32 %v1569_v13, %v1022_v37  ;;  %v1158_v60 = vadd.f32 %v1157_v38, %v2930_v5  ;;  %v1311_v62 = vsel %vm226_vm8, %v2942_v25, %v1166_v28 }
 0x60e   : > { %v1042_v41 = vmul.f32 1.442695, %v1037_v33  ;;  %v1034_v44 = vmin.f32 %v1028_v34, 0.0  ;;  %v1169_v45 = vmul.f32 %v1163_v35, %v1028_v34  ;;  %2102 = vmatprep.mubr.f32.mxu0 %v1311_v62  ;;  %vm1059_vm9 = vcmp.gt.f32.partialorder %v1028_v34, 0.0 }
 0x60f   : > { %v1040_v48 = vmul.f32 1.442695, %v1036_v39  ;;  %v1033_v3 = vmin.f32 %v1023_v40, 0.0  ;;  %v1168_v50 = vmul.f32 %v1158_v60, %v1023_v40  ;;  %2103 = vmatmul.mubr.f32.vlgmr.msra.gmra.mrb[16].mxu0 %v1312_v47  ;;  %vm1058_vm7 = vcmp.gt.f32.partialorder %v1023_v40, 0.0 }
 0x610   : > { %2525 = vpow2.f32 %v1042_v41  ;;  %v1039_v51 = vmul.f32 0.723463, %v1034_v44 }
 0x611   : > { %v1038_v52 = vmul.f32 0.723463, %v1033_v3  ;;  %2527 = vpow2.f32 %v1040_v48  ;;  %v1313_v11 = vsel %vm226_vm8, %v2948_v30, %v1168_v50  ;;  %v1314_v30 = vsel %vm226_vm8, %v2951_v31, %v1169_v45 }
 0x612   : > { %v1046_v5 = vmul.f32 1.442695, %v1039_v51 }
 0x613   : > { %v1044_v53 = vmul.f32 1.442695, %v1038_v52 }
 0x614   : > { %2529 = vpow2.f32 %v1046_v5 }
 0x615   : > { %2531 = vpow2.f32 %v1044_v53 }
 0x61a   : > { %v2526_v25 = vpop.eup %2525 }
 0x61b   : > { %v2528_v54 = vpop.eup %2527  ;;  %v1571_v56 = vadd.f32 -1.0, %v2526_v25 }
 0x61c   : > { %v1570_v58 = vadd.f32 -1.0, %v2528_v54 }
 0x61d   : > { %v1053_v59 = vmul.f32 1.3822407, %v1571_v56 }
 0x61e   : > { %v2530_v61 = vpop.eup %2529  ;;  %v1052_v63 = vmul.f32 1.3822407, %v1570_v58 }
 0x61f   : > { %v2532_v27 = vpop.eup %2531  ;;  %v1573_v0 = vadd.f32 -1.0, %v2530_v61  ;;  %v1061_v6 = vsel %vm1057_vm6, %v1018_v16, %v1053_v59 }
 0x620   : > { %v1060_v2 = vsel %vm1056_vm5, %v1013_v20, %v1052_v63  ;;  %v1572_v4 = vadd.f32 -1.0, %v2532_v27 }
 0x621   : > { %2064 = vmatprep.mubr.f32.mxu1 %v1060_v2  ;;  %v1055_v7 = vmul.f32 1.3822407, %v1573_v0 }
 0x622   : > { %2065 = vmatmul.mubr.f32.vlgmr.msra.gmra.mrb[12].mxu1 %v1061_v6  ;;  %v1054_v8 = vmul.f32 1.3822407, %v1572_v4 }
 0x623   : > { %2404 = vmatpush3.bf16.msra.mxu1 %v2981_v42  ;;  %v1063_v10 = vsel %vm1059_vm9, %v1028_v34, %v1055_v7 }
 0x624   : > { %v1062_v9 = vsel %vm1058_vm7, %v1023_v40, %v1054_v8  ;;  %2397 = vmatprep.subr.bf16.mxu1 %v2990_v21 }
 0x625   : > { %2067 = vmatprep.mubr.f32.mxu1 %v1062_v9 }
 0x626   : > { %2068 = vmatmul.mubr.f32.gmra.mrb[14].mxu1 %v1063_v10 }
 0x627   : > { %2405 = vmatpush3.bf16.msra.mxu1 %v2990_v21  ;;  %2105 = vmatprep.mubr.f32.mxu1 %v1313_v11 }
 0x628   : > { %2398 = vmatprep.subr.bf16.mxu1 %v2996_v36 }
 0x62b   : > { %2406 = vmatpush3.bf16.msra.mxu1 %v2996_v36  ;;  %v1574_v36 = vld [vmem:[#allocation7 + $0x7] ss:$0 sm:$0xff] }
 0x62c   : > { %2399 = vmatprep.subr.bf16.mxu1 %v3000_v23 }
 0x62f   : > { %2407 = vmatpush3.bf16.msra.mxu1 %v3000_v23 }
 0x630   : > { %2400 = vmatprep.subr.bf16.mxu1 %v3004_v43 }
 0x633   : > { %2408 = vmatpush3.bf16.msra.mxu1 %v3004_v43 }
 0x634   : > { %2401 = vmatprep.subr.bf16.mxu1 %v3008_v46 }
 0x637   : > { %2409 = vmatpush3.bf16.msra.mxu1 %v3008_v46 }
 0x638   : > { %2402 = vmatprep.subr.bf16.mxu1 %v3013_v49 }
 0x63b   : > { %2410 = vmatpush3.bf16.msra.mxu1 %v3013_v49 }
 0x63c   : > { %2403 = vmatprep.subr.bf16.mxu1 %v3017_v55 }
 0x63f   : > { %2411 = vmatpush3.bf16.msra.mxu1 %v3017_v55 }
 0x642   : > { %2106 = vmatmul.mubr.f32.vlgmr.msra.gmra.mrb[16].mxu1 %v1314_v30 }
 0x6e2   : > { %v2104_v42 = vpop.f32.mrb[16].mxu0 }
 0x6e3   : > { %v1398_v21 = vpop.f32.mrb[17].mxu0 }
 0x6f5   : > { %v2066_v23 = vpop.f32.mrb[12].mxu1 }
 0x6f6   : > { %v1264_v43 = vadd.f32 %v2066_v23, %v1574_v36  ;;  %v1258_v12 = vpop.f32.mrb[13].mxu1 }
 0x6f7   : > { %v1259_v46 = vadd.f32 %v1574_v36, %v1258_v12 }
 0x6f8   : > { %v1278_v13 = vmin.f32 %v1264_v43, 0.0  ;;  %vm1302_vm8 = vcmp.gt.f32.partialorder %v1264_v43, 0.0 }
 0x6f9   : > { %v1277_v14 = vmin.f32 %v1259_v46, 0.0  ;;  %v2069_v15 = vpop.f32.mrb[14].mxu1  ;;  %vm1301_vm10 = vcmp.gt.f32.partialorder %v1259_v46, 0.0 }
 0x6fa   : > { %v1282_v49 = vmul.f32 0.723463, %v1278_v13  ;;  %v1274_v16 = vadd.f32 %v2069_v15, %v1574_v36  ;;  %v1268_v17 = vpop.f32.mrb[15].mxu1 }
 0x6fb   : > { %v1281_v18 = vmul.f32 0.723463, %v1277_v14  ;;  %v1269_v55 = vadd.f32 %v1574_v36, %v1268_v17 }
 0x6fc   : > { %v1287_v19 = vmul.f32 1.442695, %v1282_v49  ;;  %v1280_v20 = vmin.f32 %v1274_v16, 0.0  ;;  %vm1304_vm11 = vcmp.gt.f32.partialorder %v1274_v16, 0.0 }
 0x6fd   : > { %v1285_v57 = vmul.f32 1.442695, %v1281_v18  ;;  %v1279_v31 = vmin.f32 %v1269_v55, 0.0  ;;  %vm1303_vm12 = vcmp.gt.f32.partialorder %v1269_v55, 0.0 }
 0x6fe   : > { %2533 = vpow2.f32 %v1287_v19  ;;  %v1284_v1 = vmul.f32 0.723463, %v1280_v20 }
 0x6ff   : > { %2535 = vpow2.f32 %v1285_v57  ;;  %v1283_v22 = vmul.f32 0.723463, %v1279_v31 }
 0x700   : > { %v1291_v24 = vmul.f32 1.442695, %v1284_v1 }
 0x701   : > { %v1289_v26 = vmul.f32 1.442695, %v1283_v22 }
 0x702   : > { %2537 = vpow2.f32 %v1291_v24 }
 0x703   : > { %2539 = vpow2.f32 %v1289_v26 }
 0x708   : > { %v2534_v28 = vpop.eup %2533 }
 0x709   : > { %v2536_v29 = vpop.eup %2535  ;;  %v1576_v32 = vadd.f32 -1.0, %v2534_v28 }
 0x70a   : > { %v1575_v33 = vadd.f32 -1.0, %v2536_v29 }
 0x70b   : > { %v1298_v34 = vmul.f32 1.3822407, %v1576_v32 }
 0x70c   : > { %v2538_v35 = vpop.eup %2537  ;;  %v1297_v37 = vmul.f32 1.3822407, %v1575_v33 }
 0x70d   : > { %v2540_v38 = vpop.eup %2539  ;;  %v1306_v39 = vsel %vm1302_vm8, %v1264_v43, %v1298_v34  ;;  %v1578_v40 = vadd.f32 -1.0, %v2538_v35 }
 0x70e   : > { %v1418_v60 = vadd.f32 %v2104_v42, %v1306_v39  ;;  %v1305_v62 = vsel %vm1301_vm10, %v1259_v46, %v1297_v37  ;;  %v1577_v41 = vadd.f32 -1.0, %v2540_v38 }
 0x70f   : > { %v1417_v44 = vadd.f32 %v1398_v21, %v1305_v62  ;;  %v1300_v45 = vmul.f32 1.3822407, %v1578_v40 }
 0x710   : > { %1422 = vst [vmem:[%s217_s18 + $0x8] sm:$0xff] %v1418_v60  ;;  %v1299_v47 = vmul.f32 1.3822407, %v1577_v41 }
 0x711   : > { %1421 = vst [vmem:[%s217_s18] sm:$0xff] %v1417_v44  ;;  %v1308_v48 = vsel %vm1304_vm11, %v1274_v16, %v1300_v45 }
 0x712   : > { %v1307_v51 = vsel %vm1303_vm12, %v1269_v55, %v1299_v47 }
 0x715   : > { %v2107_v3 = vpop.f32.mrb[16].mxu1 }
 0x716   : > { %v1420_v50 = vadd.f32 %v2107_v3, %v1308_v48  ;;  %v1408_v52 = vpop.f32.mrb[17].mxu1 }
 0x717   : > { %v1419_v5 = vadd.f32 %v1408_v52, %v1307_v51 }
 0x718   : > { %1424 = vst [vmem:[%s217_s18 + $0x18] sm:$0xff] %v1420_v50 }
 0x719   : > { %1423 = vst [vmem:[%s217_s18 + $0x10] sm:$0xff] %v1419_v5 }
 0x71a   : > { %2640 = shalt.err (!%p2637_p7)
}
 0x71b   : > { %s2641_s10 = scalar_lea.hbm %s3061_s27, 512  ;;  %s2645_s26 = scalar_lea.hbm %s3107_s3, 1536 }
 0x71c   : > { %p2642_p9 = scmp.ne.s32.totalorder %s3061_s27, %s2641_s10  ;;  %p2646_p5 = scmp.lt.u32.totalorder %s3061_s27, %s3107_s3 }
 0x71d   : > { %p2647_p10 = scmp.lt.u32.totalorder %s2645_s26, %s2641_s10  ;;  %p2649_p2 = scmp.lt.u32.totalorder %s2641_s10, %s3061_s27 }
 0x71e   : > { %p2643_p12 = pnand %p2642_p9, %p2847_p6 }
 0x71f   : > { %p2648_p1 = por %p2647_p10, %p2646_p5 }
 0x720   : > { %p2644_p0 = pneg %p2643_p12 }
 0x721   : > { %p2650_p4 = por %p2649_p2, %p2648_p1 }
 0x723   : > { %p2651_p8 = pnand %p2650_p4, %p2644_p0 }
 0x725   : > { %2654 = shalt.err (!%p2651_p8)
}
 0x726   : > { %s2707_s28 = smov 128   ;;  %s2708_s18 = smov 8  }
 0x727   : > { %2422 = dma.vmem_to_hbm [thread:$0]  (%p2847_p6), %s3056_s20, 512, %s3061_s27, %s1426_s16, %s2707_s28, %s2707_s28, %s2708_s18  }
 0x728 PF: > { %p2444_p11 = scmp.ge.s32.totalorder %s2697_s15, 2  ;;  %s1454_s7 = sand.u32 1, %s2685_s12  }
 0x729   : > { %p3122_p13 = scmp.ne.s32.totalorder %s3112_s19, 0  ;;  %s1455_s8 = scalar_lea.sflag [#allocation4], %s1454_s7 }
 0x72b   : > { %p2436_p3 = pnand %p2444_p11, %p3122_p13 }
 0x72d   : > { %2680 = dma.done.wait (!%p2436_p3), %s1455_s8, 512  }
 0x72e   : > { %2682 = vsyncadd (!%p2436_p3), %s1455_s8, 4294966784  ;;  %p17_p7 = scmp.ge.s32.totalorder %s2837_s23, 5   ;;  %s3123_s12 = smov %s2689_s13 }
 0x72f   : > { %s3124_s13 = smov %s2693_s14  ;;  %s3125_s14 = smov %s2853_s9 }
 0x730   : > { %s3126_s15 = smov %s2837_s23  ;;  %19 = sbr.rel (!%p17_p7) target bundleno = 6 (0x6), region = 93 }
 0x737   :  { %1460 = vsyncpa [#allocation3], 1 }
 0x738   :  { %1462 = vsyncpa [#allocation3 + $0x1], 1 }
 0x739   :  { %1463 = vsyncpa [#allocation6], 1 }
 0x73a   :  { %1464 = vsyncpa [#allocation4], 1 }
 0x73b   :  { %1466 = vsyncpa [#allocation4 + $0x1], 1 }

</bundles_post_ra>
